<compile_context>
chip_gen: v7x
topology: tpu7x:2x2x1
jax: 0.10.0
libtpu: 0.0.40
codegen_flags: <defaults>
</compile_context>

<pallas_src>
import jax
import jax.numpy as jnp
from jax.experimental import pallas as pl
from jax.experimental.pallas import tpu as pltpu


def _round_up(x, m):
    return ((x + m - 1) // m) * m


# ------------------------------ Pallas kernel ------------------------------ #

def _gcn_bn_relu(h_bf16, a_bf16, w_ref, b_ref, s_ref, t_ref):
    # GCNConv: A_hat @ (H @ W) + bias  (bias added after aggregation, as in PyG)
    hw = jnp.dot(h_bf16, w_ref[...], preferred_element_type=jnp.float32)          # [n, H] f32
    agg = jnp.dot(a_bf16, hw.astype(jnp.bfloat16),
                  preferred_element_type=jnp.float32) + b_ref[...]                # [n, H] f32
    # eval-mode BatchNorm1d folded into per-feature scale/shift, then ReLU
    return jnp.maximum(agg * s_ref[...] + t_ref[...], 0.0)


def gnn_encoder_kernel(a_ref, x_ref, pool_ref,
                       w1_ref, b1_ref, s1_ref, t1_ref,
                       w2_ref, b2_ref, s2_ref, t2_ref,
                       w3_ref, b3_ref, s3_ref, t3_ref,
                       wfc_ref, bfc_ref,
                       out_ref):
    # One grid step == one graph of the batch.  All refs are VMEM tiles.
    a = a_ref[...]                                                        # [n_pad, n_pad] bf16
    h = _gcn_bn_relu(x_ref[...], a, w1_ref, b1_ref, s1_ref, t1_ref)       # [n_pad, H] f32
    h = _gcn_bn_relu(h.astype(jnp.bfloat16), a, w2_ref, b2_ref, s2_ref, t2_ref)
    h = _gcn_bn_relu(h.astype(jnp.bfloat16), a, w3_ref, b3_ref, s3_ref, t3_ref)
    # global mean pool for this graph (pool row already holds 1/count at valid nodes, 0 on pad)
    g = jnp.dot(pool_ref[...], h, preferred_element_type=jnp.float32)     # [1, H] f32
    # final Linear + ReLU (dropout = identity in eval mode)
    out = jnp.dot(g.astype(jnp.bfloat16), wfc_ref[...],
                  preferred_element_type=jnp.float32) + bfc_ref[...]      # [1, O_pad]
    out_ref[...] = jnp.maximum(out, 0.0)


# ------------------------------ parameters --------------------------------- #

def init_params(key, node_feat_dim, hidden_dim, output_dim):
    f_pad = _round_up(node_feat_dim, 128)
    h_pad = _round_up(hidden_dim, 128)
    o_pad = _round_up(output_dim, 128)
    ks = jax.random.split(key, 8)
    eps = 1e-5

    def lin(k, fan_in, fan_out, rows_pad, cols_pad):
        w = (jax.random.normal(k, (fan_in, fan_out), jnp.float32)
             / jnp.sqrt(jnp.float32(fan_in)))
        return jnp.pad(w, ((0, rows_pad - fan_in), (0, cols_pad - fan_out)))

    def bn_fold(dim, dim_pad):
        gamma = jnp.ones((dim,), jnp.float32)
        beta = jnp.zeros((dim,), jnp.float32)
        running_mean = jnp.zeros((dim,), jnp.float32)
        running_var = jnp.ones((dim,), jnp.float32)
        scale = gamma / jnp.sqrt(running_var + eps)
        shift = beta - running_mean * scale
        scale = jnp.pad(scale, (0, dim_pad - dim), constant_values=1.0)
        shift = jnp.pad(shift, (0, dim_pad - dim))
        return scale.reshape(1, dim_pad), shift.reshape(1, dim_pad)

    p = {}
    p["w1"] = lin(ks[0], node_feat_dim, hidden_dim, f_pad, h_pad)
    p["b1"] = jnp.zeros((1, h_pad), jnp.float32)
    p["s1"], p["t1"] = bn_fold(hidden_dim, h_pad)
    p["w2"] = lin(ks[1], hidden_dim, hidden_dim, h_pad, h_pad)
    p["b2"] = jnp.zeros((1, h_pad), jnp.float32)
    p["s2"], p["t2"] = bn_fold(hidden_dim, h_pad)
    p["w3"] = lin(ks[2], hidden_dim, hidden_dim, h_pad, h_pad)
    p["b3"] = jnp.zeros((1, h_pad), jnp.float32)
    p["s3"], p["t3"] = bn_fold(hidden_dim, h_pad)
    # nn.Linear(hidden, output): stored as [hidden, output] (== W.T), zero-padded
    p["wfc"] = lin(ks[3], hidden_dim, output_dim, h_pad, o_pad)
    bfc = (jax.random.normal(ks[4], (output_dim,), jnp.float32)
           / jnp.sqrt(jnp.float32(hidden_dim)))
    p["bfc"] = jnp.pad(bfc, (0, o_pad - output_dim)).reshape(1, o_pad)
    return p


# ------------------------------ graph densification ------------------------ #

def build_graph_blocks(x_all, edge_index, batch_index, batch_size, n_pad, f_pad):
    """Per-graph dense blocks: A_hat [B,n_pad,n_pad], X [B,n_pad,f_pad], pool [B,1,n_pad]."""
    num_nodes, feat_dim = x_all.shape
    node_ar = jnp.arange(num_nodes)

    graph_ids = jnp.arange(batch_size, dtype=batch_index.dtype)
    onehot = (batch_index[None, :] == graph_ids[:, None])            # [B, N] bool
    counts = onehot.sum(axis=1).astype(jnp.float32)                  # [B]
    rank = jnp.cumsum(onehot.astype(jnp.int32), axis=1) - 1          # [B, N]
    local_idx = rank[batch_index, node_ar]                           # [N] position within graph

    # node features, scattered into per-graph blocks (zero padded to f_pad lanes)
    x_pad = jnp.pad(x_all.astype(jnp.float32), ((0, 0), (0, f_pad - feat_dim)))
    x_blocks = jnp.zeros((batch_size, n_pad, f_pad), jnp.float32)
    x_blocks = x_blocks.at[batch_index, local_idx].set(x_pad)

    # per-graph adjacency (duplicate edges accumulate, matching summing GCNConv) + self loops
    src, dst = edge_index[0], edge_index[1]
    g_e = batch_index[src]
    adj = jnp.zeros((batch_size, n_pad, n_pad), jnp.float32)
    adj = adj.at[g_e, local_idx[dst], local_idx[src]].add(1.0)
    adj = adj.at[batch_index, local_idx, local_idx].add(1.0)         # self loops (real nodes only)

    deg = adj.sum(axis=2)                                            # [B, n_pad]
    dinv = jnp.where(deg > 0, jax.lax.rsqrt(deg), 0.0)
    a_hat = dinv[:, :, None] * adj * dinv[:, None, :]                # D^-1/2 (A+I) D^-1/2

    # mean-pool row per graph (1/count at valid node slots, 0 at padding); kept f32 for exactness
    valid = jnp.zeros((batch_size, n_pad), jnp.float32)
    valid = valid.at[batch_index, local_idx].set(1.0)
    pool = (valid / jnp.maximum(counts, 1.0)[:, None]).reshape(batch_size, 1, n_pad)
    return a_hat, x_blocks, pool


# ------------------------------ wrapper ------------------------------------ #

def gnn_encoder_forward(x_all, edge_index, batch_index, batch_size,
                        max_nodes_per_graph, params, output_dim):
    x_all = x_all.astype(jnp.float32)
    f_pad, h_pad = params["w1"].shape
    o_pad = params["wfc"].shape[1]
    n_pad = _round_up(max(int(max_nodes_per_graph), 8), 128)

    a_hat, x_blocks, pool = build_graph_blocks(
        x_all, edge_index, batch_index, batch_size, n_pad, f_pad)

    # bf16 MXU operands, f32 accumulation inside the kernel
    bf = jnp.bfloat16
    inputs = (
        a_hat.astype(bf), x_blocks.astype(bf), pool,
        params["w1"].astype(bf), params["b1"], params["s1"], params["t1"],
        params["w2"].astype(bf), params["b2"], params["s2"], params["t2"],
        params["w3"].astype(bf), params["b3"], params["s3"], params["t3"],
        params["wfc"].astype(bf), params["bfc"],
    )

    def const_spec(shape):
        return pl.BlockSpec(shape, lambda b: tuple(0 for _ in shape))

    in_specs = [
        pl.BlockSpec((None, n_pad, n_pad), lambda b: (b, 0, 0)),   # A_hat[b]
        pl.BlockSpec((None, n_pad, f_pad), lambda b: (b, 0, 0)),   # X[b]
        pl.BlockSpec((None, 1, n_pad), lambda b: (b, 0, 0)),       # pool[b]
        const_spec((f_pad, h_pad)), const_spec((1, h_pad)),        # w1, b1
        const_spec((1, h_pad)), const_spec((1, h_pad)),            # s1, t1
        const_spec((h_pad, h_pad)), const_spec((1, h_pad)),        # w2, b2
        const_spec((1, h_pad)), const_spec((1, h_pad)),            # s2, t2
        const_spec((h_pad, h_pad)), const_spec((1, h_pad)),        # w3, b3
        const_spec((1, h_pad)), const_spec((1, h_pad)),            # s3, t3
        const_spec((h_pad, o_pad)), const_spec((1, o_pad)),        # wfc, bfc
    ]
    out_specs = pl.BlockSpec((None, 1, o_pad), lambda b: (b, 0, 0))

    # --- VMEM budget (double-buffered blocks + f32 intermediates headroom) ---
    per_step = (n_pad * n_pad + n_pad * f_pad) * 2 + n_pad * 4
    weights = ((f_pad * h_pad + 2 * h_pad * h_pad + h_pad * o_pad) * 2
               + (9 * h_pad + o_pad) * 4)
    out_blk = o_pad * 4
    interm = 6 * n_pad * h_pad * 4
    needed = 2 * (per_step + weights + out_blk) + interm
    vmem_limit = int(min(56 * 1024 * 1024, max(8 * 1024 * 1024, 2 * needed)))

    # --- cost estimate for the XLA scheduler ---
    flops_per_graph = (2 * n_pad * f_pad * h_pad + 2 * n_pad * n_pad * h_pad      # layer 1
                       + 2 * (2 * n_pad * h_pad * h_pad + 2 * n_pad * n_pad * h_pad)  # layers 2,3
                       + 2 * n_pad * h_pad                                        # pool
                       + 2 * h_pad * o_pad)                                       # fc
    flops = int(batch_size * flops_per_graph)
    bytes_accessed = int(sum(a.size * a.dtype.itemsize for a in inputs)
                         + batch_size * o_pad * 4)

    out = pl.pallas_call(
        gnn_encoder_kernel,
        out_shape=jax.ShapeDtypeStruct((batch_size, 1, o_pad), jnp.float32),
        grid_spec=pltpu.PrefetchScalarGridSpec(
            num_scalar_prefetch=0,
            grid=(batch_size,),
            in_specs=in_specs,
            out_specs=out_specs,
        ),
        compiler_params=pltpu.CompilerParams(
            dimension_semantics=("parallel",),   # graph axis -> 2 TCs on v7x
            vmem_limit_bytes=vmem_limit,
        ),
        cost_estimate=pl.CostEstimate(flops=flops, transcendentals=0,
                                      bytes_accessed=bytes_accessed),
    )(*inputs)

    return out.reshape(batch_size, o_pad)[:, :output_dim]


# ------------------------------ demo ---------------------------------------- #

if __name__ == "__main__":
    key = jax.random.PRNGKey(0)
    kx, ks, kd, kp = jax.random.split(key, 4)

    # small shapes consistent with the module (hidden_dim matches the module default of 128)
    batch_size = 2
    nodes_per_graph = 8
    num_nodes = batch_size * nodes_per_graph        # 16 total nodes
    node_feat_dim = 11                              # module default
    hidden_dim = 128
    output_dim = 256
    edges_per_graph = 12

    x_all = jax.random.normal(kx, (num_nodes, node_feat_dim), jnp.float32)

    # random edges, kept within each subgraph
    src0 = jax.random.randint(ks, (edges_per_graph,), 0, nodes_per_graph)
    dst0 = jax.random.randint(kd, (edges_per_graph,), 0, nodes_per_graph)
    src = jnp.concatenate([src0, src0 + nodes_per_graph])
    dst = jnp.concatenate([dst0, dst0 + nodes_per_graph])
    edge_index_all = jnp.stack([src, dst]).astype(jnp.int32)   # [2, sum_edges]

    batch_index = jnp.repeat(jnp.arange(batch_size, dtype=jnp.int32), nodes_per_graph)

    params = init_params(kp, node_feat_dim, hidden_dim, output_dim)

    out = gnn_encoder_forward(x_all, edge_index_all, batch_index, batch_size,
                              nodes_per_graph, params, output_dim)
    out = jax.block_until_ready(out)
    assert out.shape == (batch_size, output_dim)
    assert bool(jnp.all(jnp.isfinite(out)))
    print("KERNEL_OK")
</pallas_src>

<mosaic_0001>
module attributes {stable_mosaic.version = 11 : i64} {
  func.func @gnn_encoder_kernel(%arg0: i32, %arg1: memref<1x128x128xbf16, #tpu.memory_space<vmem>>, %arg2: memref<1x128x128xbf16, #tpu.memory_space<vmem>>, %arg3: memref<1x1x128xf32, #tpu.memory_space<vmem>>, %arg4: memref<128x128xbf16, #tpu.memory_space<vmem>>, %arg5: memref<1x128xf32, #tpu.memory_space<vmem>>, %arg6: memref<1x128xf32, #tpu.memory_space<vmem>>, %arg7: memref<1x128xf32, #tpu.memory_space<vmem>>, %arg8: memref<128x128xbf16, #tpu.memory_space<vmem>>, %arg9: memref<1x128xf32, #tpu.memory_space<vmem>>, %arg10: memref<1x128xf32, #tpu.memory_space<vmem>>, %arg11: memref<1x128xf32, #tpu.memory_space<vmem>>, %arg12: memref<128x128xbf16, #tpu.memory_space<vmem>>, %arg13: memref<1x128xf32, #tpu.memory_space<vmem>>, %arg14: memref<1x128xf32, #tpu.memory_space<vmem>>, %arg15: memref<1x128xf32, #tpu.memory_space<vmem>>, %arg16: memref<128x256xbf16, #tpu.memory_space<vmem>>, %arg17: memref<1x256xf32, #tpu.memory_space<vmem>>, %arg18: memref<1x1x256xf32, #tpu.memory_space<vmem>>) attributes {dimension_semantics = [#tpu.dimension_semantics<parallel>], iteration_bounds = array<i64: 2>, scalar_prefetch = 0 : i64, scratch_operands = 0 : i64, tpu.core_type = #tpu.core_type<tc>, window_params = [{transform_indices = @transform_0, window_bounds = array<i64: 1, 128, 128>}, {transform_indices = @transform_1, window_bounds = array<i64: 1, 128, 128>}, {transform_indices = @transform_2, window_bounds = array<i64: 1, 1, 128>}, {pipeline_mode = #tpu.pipeline_mode<synchronous>, transform_indices = @transform_3, window_bounds = array<i64: 128, 128>}, {pipeline_mode = #tpu.pipeline_mode<synchronous>, transform_indices = @transform_4, window_bounds = array<i64: 1, 128>}, {pipeline_mode = #tpu.pipeline_mode<synchronous>, transform_indices = @transform_5, window_bounds = array<i64: 1, 128>}, {pipeline_mode = #tpu.pipeline_mode<synchronous>, transform_indices = @transform_6, window_bounds = array<i64: 1, 128>}, {pipeline_mode = #tpu.pipeline_mode<synchronous>, transform_indices = @transform_7, window_bounds = array<i64: 128, 128>}, {pipeline_mode = #tpu.pipeline_mode<synchronous>, transform_indices = @transform_8, window_bounds = array<i64: 1, 128>}, {pipeline_mode = #tpu.pipeline_mode<synchronous>, transform_indices = @transform_9, window_bounds = array<i64: 1, 128>}, {pipeline_mode = #tpu.pipeline_mode<synchronous>, transform_indices = @transform_10, window_bounds = array<i64: 1, 128>}, {pipeline_mode = #tpu.pipeline_mode<synchronous>, transform_indices = @transform_11, window_bounds = array<i64: 128, 128>}, {pipeline_mode = #tpu.pipeline_mode<synchronous>, transform_indices = @transform_12, window_bounds = array<i64: 1, 128>}, {pipeline_mode = #tpu.pipeline_mode<synchronous>, transform_indices = @transform_13, window_bounds = array<i64: 1, 128>}, {pipeline_mode = #tpu.pipeline_mode<synchronous>, transform_indices = @transform_14, window_bounds = array<i64: 1, 128>}, {pipeline_mode = #tpu.pipeline_mode<synchronous>, transform_indices = @transform_15, window_bounds = array<i64: 128, 256>}, {pipeline_mode = #tpu.pipeline_mode<synchronous>, transform_indices = @transform_16, window_bounds = array<i64: 1, 256>}, {transform_indices = @transform_17, window_bounds = array<i64: 1, 1, 256>}]} {
    %c0 = arith.constant 0 : index
    %c0_0 = arith.constant 0 : index
    %c0_1 = arith.constant 0 : index
    %0 = vector.load %arg1[%c0, %c0_0, %c0_1] : memref<1x128x128xbf16, #tpu.memory_space<vmem>>, vector<1x128x128xbf16>
    %1 = vector.shape_cast %0 : vector<1x128x128xbf16> to vector<128x128xbf16>
    %c0_2 = arith.constant 0 : index
    %c0_3 = arith.constant 0 : index
    %c0_4 = arith.constant 0 : index
    %2 = vector.load %arg2[%c0_2, %c0_3, %c0_4] : memref<1x128x128xbf16, #tpu.memory_space<vmem>>, vector<1x128x128xbf16>
    %3 = vector.shape_cast %2 : vector<1x128x128xbf16> to vector<128x128xbf16>
    %c0_5 = arith.constant 0 : index
    %c0_6 = arith.constant 0 : index
    %4 = vector.load %arg4[%c0_5, %c0_6] : memref<128x128xbf16, #tpu.memory_space<vmem>>, vector<128x128xbf16>
    %cst = arith.constant dense<0.000000e+00> : vector<128x128xf32>
    %5 = tpu.matmul %3, %4, %cst {dimension_numbers = #tpu.dot_dimension_numbers<[1], [0], [0], [1], [0, 0, 1, 1], [], []>} : vector<128x128xbf16>, vector<128x128xbf16>, vector<128x128xf32> -> vector<128x128xf32>
    %6 = arith.truncf %5 : vector<128x128xf32> to vector<128x128xbf16>
    %cst_7 = arith.constant dense<0.000000e+00> : vector<128x128xf32>
    %7 = tpu.matmul %1, %6, %cst_7 {dimension_numbers = #tpu.dot_dimension_numbers<[1], [0], [0], [1], [0, 0, 1, 1], [], []>} : vector<128x128xbf16>, vector<128x128xbf16>, vector<128x128xf32> -> vector<128x128xf32>
    %c0_8 = arith.constant 0 : index
    %c0_9 = arith.constant 0 : index
    %8 = vector.load %arg5[%c0_8, %c0_9] : memref<1x128xf32, #tpu.memory_space<vmem>>, vector<1x128xf32>
    %9 = vector.broadcast %8 : vector<1x128xf32> to vector<128x128xf32>
    %10 = arith.addf %7, %9 : vector<128x128xf32>
    %c0_10 = arith.constant 0 : index
    %c0_11 = arith.constant 0 : index
    %11 = vector.load %arg6[%c0_10, %c0_11] : memref<1x128xf32, #tpu.memory_space<vmem>>, vector<1x128xf32>
    %12 = vector.broadcast %11 : vector<1x128xf32> to vector<128x128xf32>
    %13 = arith.mulf %10, %12 : vector<128x128xf32>
    %c0_12 = arith.constant 0 : index
    %c0_13 = arith.constant 0 : index
    %14 = vector.load %arg7[%c0_12, %c0_13] : memref<1x128xf32, #tpu.memory_space<vmem>>, vector<1x128xf32>
    %15 = vector.broadcast %14 : vector<1x128xf32> to vector<128x128xf32>
    %16 = arith.addf %13, %15 : vector<128x128xf32>
    %cst_14 = arith.constant 0.000000e+00 : f32
    %17 = vector.broadcast %cst_14 : f32 to vector<128x128xf32>
    %18 = arith.maximumf %16, %17 : vector<128x128xf32>
    %19 = arith.truncf %18 : vector<128x128xf32> to vector<128x128xbf16>
    %c0_15 = arith.constant 0 : index
    %c0_16 = arith.constant 0 : index
    %20 = vector.load %arg8[%c0_15, %c0_16] : memref<128x128xbf16, #tpu.memory_space<vmem>>, vector<128x128xbf16>
    %cst_17 = arith.constant dense<0.000000e+00> : vector<128x128xf32>
    %21 = tpu.matmul %19, %20, %cst_17 {dimension_numbers = #tpu.dot_dimension_numbers<[1], [0], [0], [1], [0, 0, 1, 1], [], []>} : vector<128x128xbf16>, vector<128x128xbf16>, vector<128x128xf32> -> vector<128x128xf32>
    %22 = arith.truncf %21 : vector<128x128xf32> to vector<128x128xbf16>
    %cst_18 = arith.constant dense<0.000000e+00> : vector<128x128xf32>
    %23 = tpu.matmul %1, %22, %cst_18 {dimension_numbers = #tpu.dot_dimension_numbers<[1], [0], [0], [1], [0, 0, 1, 1], [], []>} : vector<128x128xbf16>, vector<128x128xbf16>, vector<128x128xf32> -> vector<128x128xf32>
    %c0_19 = arith.constant 0 : index
    %c0_20 = arith.constant 0 : index
    %24 = vector.load %arg9[%c0_19, %c0_20] : memref<1x128xf32, #tpu.memory_space<vmem>>, vector<1x128xf32>
    %25 = vector.broadcast %24 : vector<1x128xf32> to vector<128x128xf32>
    %26 = arith.addf %23, %25 : vector<128x128xf32>
    %c0_21 = arith.constant 0 : index
    %c0_22 = arith.constant 0 : index
    %27 = vector.load %arg10[%c0_21, %c0_22] : memref<1x128xf32, #tpu.memory_space<vmem>>, vector<1x128xf32>
    %28 = vector.broadcast %27 : vector<1x128xf32> to vector<128x128xf32>
    %29 = arith.mulf %26, %28 : vector<128x128xf32>
    %c0_23 = arith.constant 0 : index
    %c0_24 = arith.constant 0 : index
    %30 = vector.load %arg11[%c0_23, %c0_24] : memref<1x128xf32, #tpu.memory_space<vmem>>, vector<1x128xf32>
    %31 = vector.broadcast %30 : vector<1x128xf32> to vector<128x128xf32>
    %32 = arith.addf %29, %31 : vector<128x128xf32>
    %cst_25 = arith.constant 0.000000e+00 : f32
    %33 = vector.broadcast %cst_25 : f32 to vector<128x128xf32>
    %34 = arith.maximumf %32, %33 : vector<128x128xf32>
    %35 = arith.truncf %34 : vector<128x128xf32> to vector<128x128xbf16>
    %c0_26 = arith.constant 0 : index
    %c0_27 = arith.constant 0 : index
    %36 = vector.load %arg12[%c0_26, %c0_27] : memref<128x128xbf16, #tpu.memory_space<vmem>>, vector<128x128xbf16>
    %cst_28 = arith.constant dense<0.000000e+00> : vector<128x128xf32>
    %37 = tpu.matmul %35, %36, %cst_28 {dimension_numbers = #tpu.dot_dimension_numbers<[1], [0], [0], [1], [0, 0, 1, 1], [], []>} : vector<128x128xbf16>, vector<128x128xbf16>, vector<128x128xf32> -> vector<128x128xf32>
    %38 = arith.truncf %37 : vector<128x128xf32> to vector<128x128xbf16>
    %cst_29 = arith.constant dense<0.000000e+00> : vector<128x128xf32>
    %39 = tpu.matmul %1, %38, %cst_29 {dimension_numbers = #tpu.dot_dimension_numbers<[1], [0], [0], [1], [0, 0, 1, 1], [], []>} : vector<128x128xbf16>, vector<128x128xbf16>, vector<128x128xf32> -> vector<128x128xf32>
    %c0_30 = arith.constant 0 : index
    %c0_31 = arith.constant 0 : index
    %40 = vector.load %arg13[%c0_30, %c0_31] : memref<1x128xf32, #tpu.memory_space<vmem>>, vector<1x128xf32>
    %41 = vector.broadcast %40 : vector<1x128xf32> to vector<128x128xf32>
    %42 = arith.addf %39, %41 : vector<128x128xf32>
    %c0_32 = arith.constant 0 : index
    %c0_33 = arith.constant 0 : index
    %43 = vector.load %arg14[%c0_32, %c0_33] : memref<1x128xf32, #tpu.memory_space<vmem>>, vector<1x128xf32>
    %44 = vector.broadcast %43 : vector<1x128xf32> to vector<128x128xf32>
    %45 = arith.mulf %42, %44 : vector<128x128xf32>
    %c0_34 = arith.constant 0 : index
    %c0_35 = arith.constant 0 : index
    %46 = vector.load %arg15[%c0_34, %c0_35] : memref<1x128xf32, #tpu.memory_space<vmem>>, vector<1x128xf32>
    %47 = vector.broadcast %46 : vector<1x128xf32> to vector<128x128xf32>
    %48 = arith.addf %45, %47 : vector<128x128xf32>
    %cst_36 = arith.constant 0.000000e+00 : f32
    %49 = vector.broadcast %cst_36 : f32 to vector<128x128xf32>
    %50 = arith.maximumf %48, %49 : vector<128x128xf32>
    %c0_37 = arith.constant 0 : index
    %c0_38 = arith.constant 0 : index
    %c0_39 = arith.constant 0 : index
    %51 = vector.load %arg3[%c0_37, %c0_38, %c0_39] : memref<1x1x128xf32, #tpu.memory_space<vmem>>, vector<1x1x128xf32>
    %52 = vector.shape_cast %51 : vector<1x1x128xf32> to vector<1x128xf32>
    %cst_40 = arith.constant dense<0.000000e+00> : vector<1x128xf32>
    %53 = tpu.matmul %52, %50, %cst_40 {dimension_numbers = #tpu.dot_dimension_numbers<[1], [0], [0], [1], [0, 0, 1, 1], [], []>} : vector<1x128xf32>, vector<128x128xf32>, vector<1x128xf32> -> vector<1x128xf32>
    %54 = arith.truncf %53 : vector<1x128xf32> to vector<1x128xbf16>
    %c0_41 = arith.constant 0 : index
    %c0_42 = arith.constant 0 : index
    %55 = vector.load %arg16[%c0_41, %c0_42] : memref<128x256xbf16, #tpu.memory_space<vmem>>, vector<128x256xbf16>
    %cst_43 = arith.constant dense<0.000000e+00> : vector<1x256xf32>
    %56 = tpu.matmul %54, %55, %cst_43 {dimension_numbers = #tpu.dot_dimension_numbers<[1], [0], [0], [1], [0, 0, 1, 1], [], []>} : vector<1x128xbf16>, vector<128x256xbf16>, vector<1x256xf32> -> vector<1x256xf32>
    %c0_44 = arith.constant 0 : index
    %c0_45 = arith.constant 0 : index
    %57 = vector.load %arg17[%c0_44, %c0_45] : memref<1x256xf32, #tpu.memory_space<vmem>>, vector<1x256xf32>
    %58 = arith.addf %56, %57 : vector<1x256xf32>
    %cst_46 = arith.constant 0.000000e+00 : f32
    %59 = vector.broadcast %cst_46 : f32 to vector<1x256xf32>
    %60 = arith.maximumf %58, %59 : vector<1x256xf32>
    %c0_47 = arith.constant 0 : index
    %c0_48 = arith.constant 0 : index
    %c0_49 = arith.constant 0 : index
    %61 = vector.load %arg18[%c0_47, %c0_48, %c0_49] : memref<1x1x256xf32, #tpu.memory_space<vmem>>, vector<1x1x256xf32>
    %62 = vector.shape_cast %61 : vector<1x1x256xf32> to vector<1x256xf32>
    %63 = vector.shape_cast %60 : vector<1x256xf32> to vector<1x1x256xf32>
    tpu.vector_store %arg18[%c0_47, %c0_48, %c0_49], %63 {strides = array<i32>} : memref<1x1x256xf32, #tpu.memory_space<vmem>>, vector<1x1x256xf32>,
    return
  }
  func.func @transform_0(%arg0: i32) -> (i32, i32, i32) {
    %c0_i32 = arith.constant 0 : i32
    %c0_i32_0 = arith.constant 0 : i32
    %c0_i32_1 = arith.constant 0 : i32
    return %arg0, %c0_i32, %c0_i32_0 : i32, i32, i32
  }
  func.func @transform_1(%arg0: i32) -> (i32, i32, i32) {
    %c0_i32 = arith.constant 0 : i32
    %c0_i32_0 = arith.constant 0 : i32
    %c0_i32_1 = arith.constant 0 : i32
    return %arg0, %c0_i32, %c0_i32_0 : i32, i32, i32
  }
  func.func @transform_2(%arg0: i32) -> (i32, i32, i32) {
    %c0_i32 = arith.constant 0 : i32
    %c0_i32_0 = arith.constant 0 : i32
    %c0_i32_1 = arith.constant 0 : i32
    return %arg0, %c0_i32, %c0_i32_0 : i32, i32, i32
  }
  func.func @transform_3(%arg0: i32) -> (i32, i32) {
    %c0_i32 = arith.constant 0 : i32
    %c0_i32_0 = arith.constant 0 : i32
    %c0_i32_1 = arith.constant 0 : i32
    return %c0_i32, %c0_i32_0 : i32, i32
  }
  func.func @transform_4(%arg0: i32) -> (i32, i32) {
    %c0_i32 = arith.constant 0 : i32
    %c0_i32_0 = arith.constant 0 : i32
    %c0_i32_1 = arith.constant 0 : i32
    return %c0_i32, %c0_i32_0 : i32, i32
  }
  func.func @transform_5(%arg0: i32) -> (i32, i32) {
    %c0_i32 = arith.constant 0 : i32
    %c0_i32_0 = arith.constant 0 : i32
    %c0_i32_1 = arith.constant 0 : i32
    return %c0_i32, %c0_i32_0 : i32, i32
  }
  func.func @transform_6(%arg0: i32) -> (i32, i32) {
    %c0_i32 = arith.constant 0 : i32
    %c0_i32_0 = arith.constant 0 : i32
    %c0_i32_1 = arith.constant 0 : i32
    return %c0_i32, %c0_i32_0 : i32, i32
  }
  func.func @transform_7(%arg0: i32) -> (i32, i32) {
    %c0_i32 = arith.constant 0 : i32
    %c0_i32_0 = arith.constant 0 : i32
    %c0_i32_1 = arith.constant 0 : i32
    return %c0_i32, %c0_i32_0 : i32, i32
  }
  func.func @transform_8(%arg0: i32) -> (i32, i32) {
    %c0_i32 = arith.constant 0 : i32
    %c0_i32_0 = arith.constant 0 : i32
    %c0_i32_1 = arith.constant 0 : i32
    return %c0_i32, %c0_i32_0 : i32, i32
  }
  func.func @transform_9(%arg0: i32) -> (i32, i32) {
    %c0_i32 = arith.constant 0 : i32
    %c0_i32_0 = arith.constant 0 : i32
    %c0_i32_1 = arith.constant 0 : i32
    return %c0_i32, %c0_i32_0 : i32, i32
  }
  func.func @transform_10(%arg0: i32) -> (i32, i32) {
    %c0_i32 = arith.constant 0 : i32
    %c0_i32_0 = arith.constant 0 : i32
    %c0_i32_1 = arith.constant 0 : i32
    return %c0_i32, %c0_i32_0 : i32, i32
  }
  func.func @transform_11(%arg0: i32) -> (i32, i32) {
    %c0_i32 = arith.constant 0 : i32
    %c0_i32_0 = arith.constant 0 : i32
    %c0_i32_1 = arith.constant 0 : i32
    return %c0_i32, %c0_i32_0 : i32, i32
  }
  func.func @transform_12(%arg0: i32) -> (i32, i32) {
    %c0_i32 = arith.constant 0 : i32
    %c0_i32_0 = arith.constant 0 : i32
    %c0_i32_1 = arith.constant 0 : i32
    return %c0_i32, %c0_i32_0 : i32, i32
  }
  func.func @transform_13(%arg0: i32) -> (i32, i32) {
    %c0_i32 = arith.constant 0 : i32
    %c0_i32_0 = arith.constant 0 : i32
    %c0_i32_1 = arith.constant 0 : i32
    return %c0_i32, %c0_i32_0 : i32, i32
  }
  func.func @transform_14(%arg0: i32) -> (i32, i32) {
    %c0_i32 = arith.constant 0 : i32
    %c0_i32_0 = arith.constant 0 : i32
    %c0_i32_1 = arith.constant 0 : i32
    return %c0_i32, %c0_i32_0 : i32, i32
  }
  func.func @transform_15(%arg0: i32) -> (i32, i32) {
    %c0_i32 = arith.constant 0 : i32
    %c0_i32_0 = arith.constant 0 : i32
    %c0_i32_1 = arith.constant 0 : i32
    return %c0_i32, %c0_i32_0 : i32, i32
  }
  func.func @transform_16(%arg0: i32) -> (i32, i32) {
    %c0_i32 = arith.constant 0 : i32
    %c0_i32_0 = arith.constant 0 : i32
    %c0_i32_1 = arith.constant 0 : i32
    return %c0_i32, %c0_i32_0 : i32, i32
  }
  func.func @transform_17(%arg0: i32) -> (i32, i32, i32) {
    %c0_i32 = arith.constant 0 : i32
    %c0_i32_0 = arith.constant 0 : i32
    %c0_i32_1 = arith.constant 0 : i32
    return %arg0, %c0_i32, %c0_i32_0 : i32, i32, i32
  }
}

</mosaic_0001>

<bundles_post_ra>
// kernel: tpu_custom_call.1
= control target key start
LH: loop header
LB: loop body
LE: loop exit
PB: predicated region body
PF: predicated region fallthrough
CT: control target
= control target key end

     0   :  { %s3817_s0 = inlined_call_operand.hbm [shape: bf16[2,128,128], index: 0, kind: input, shape index: {}]   ;;  %s3818_s1 = inlined_call_operand.hbm [shape: bf16[2,128,128], index: 1, kind: input, shape index: {}]   ;;  %s3819_s2 = inlined_call_operand.vmem [shape: f32[2,1,128], index: 2, kind: input, shape index: {}]   ;;  %s3820_s3 = inlined_call_operand.hbm [shape: bf16[128,128], index: 3, kind: input, shape index: {}]   ;;  %s3821_s4 = inlined_call_operand.vmem [shape: f32[1,128], index: 4, kind: input, shape index: {}]   ;;  %s3822_s5 = inlined_call_operand.vmem [shape: f32[1,128], index: 5, kind: input, shape index: {}]   ;;  %s3823_s6 = inlined_call_operand.vmem [shape: f32[1,128], index: 6, kind: input, shape index: {}]   ;;  %s3824_s7 = inlined_call_operand.hbm [shape: bf16[128,128], index: 7, kind: input, shape index: {}]   ;;  %s3825_s8 = inlined_call_operand.vmem [shape: f32[1,128], index: 8, kind: input, shape index: {}]   ;;  %s3826_s9 = inlined_call_operand.vmem [shape: f32[1,128], index: 9, kind: input, shape index: {}]   ;;  %s3827_s10 = inlined_call_operand.vmem [shape: f32[1,128], index: 10, kind: input, shape index: {}]   ;;  %s3828_s11 = inlined_call_operand.hbm [shape: bf16[128,128], index: 11, kind: input, shape index: {}]   ;;  %s3829_s12 = inlined_call_operand.vmem [shape: f32[1,128], index: 12, kind: input, shape index: {}]   ;;  %s3830_s13 = inlined_call_operand.vmem [shape: f32[1,128], index: 13, kind: input, shape index: {}]   ;;  %s3831_s14 = inlined_call_operand.vmem [shape: f32[1,128], index: 14, kind: input, shape index: {}]   ;;  %s3832_s15 = inlined_call_operand.hbm [shape: bf16[128,256], index: 15, kind: input, shape index: {}]   ;;  %s3833_s16 = inlined_call_operand.vmem [shape: f32[1,256], index: 16, kind: input, shape index: {}]   ;;  %s3834_s17 = inlined_call_operand.hbm [shape: f32[2,1,256], index: 17, kind: output, shape index: {}]  }
   0x1   :  { %3847 = sst [smem:[#allocation23_spill]] %s3817_s0 }
   0x2   :  { %3848 = sst [smem:[#allocation24_spill]] %s3818_s1 }
   0x3   :  { %3849 = sst [smem:[#allocation25_spill]] %s3819_s2 }
   0x4   :  { %3850 = sst [smem:[#allocation26_spill]] %s3820_s3 }
   0x5   :  { %3851 = sst [smem:[#allocation27_spill]] %s3824_s7 }
   0x6   :  { %3852 = sst [smem:[#allocation28_spill]] %s3827_s10 }
   0x7   :  { %3853 = sst [smem:[#allocation29_spill]] %s3828_s11 }
   0x8   :  { %3854 = sst [smem:[#allocation30_spill]] %s3829_s12 }
   0x9   :  { %3855 = sst [smem:[#allocation31_spill]] %s3830_s13 }
   0xa   :  { %3856 = sst [smem:[#allocation32_spill]] %s3831_s14 }
   0xb   :  { %3857 = sst [smem:[#allocation33_spill]] %s3832_s15 }
   0xc   :  { %3858 = sst [smem:[#allocation34_spill]] %s3833_s16 }
   0xd   :  { %3859 = sst [smem:[#allocation35_spill]] %s3834_s17 }
   0xe   :  { %22 = vsyncpa [#allocation3], 0 }
   0xf   :  { %24 = vsyncpa [#allocation3 + $0x1], 0 }
  0x10   :  { %25 = vsyncpa [#allocation6], 0 }
  0x11   :  { %27 = vsyncpa [#allocation6 + $0x1], 0 }
  0x12   :  { %28 = vsyncpa [#allocation9], 0 }
  0x13   :  { %29 = vsyncpa [#allocation12], 0 }
  0x14   :  { %30 = vsyncpa [#allocation4], 0 }
  0x15   :  { %32 = vsyncpa [#allocation4 + $0x1], 0  ;;  %s3215_s24 = smov 0   ;;  %s3217_s25 = smov 0  }
  0x16   :  { %s3219_s26 = smov 0   ;;  %s3221_s27 = smov 0  }
  0x17 LB: > { %3860 = sst [smem:[#allocation20_spill]] %s3095_s24  ;;  %s3236_s28 = sadd.s32 4294967295, %s3107_s27   ;;  %s3107_s27 = sphi %s3221_s27, %s3903_s27   ;;  %s3103_s26 = sphi %s3219_s26, %s3902_s26   ;;  %s3099_s25 = sphi %s3217_s25, %s3901_s25   ;;  %s3095_s24 = sphi %s3215_s24, %s3900_s24  }
  0x18   : > { %s2230_s29 = sadd.s32 4294967294, %s3107_s27   ;;  %p58_p0 = scmp.ne.s32.totalorder %s3099_s25, %s3095_s24 }
  0x19   : > { %p3840_p1 = scmp.eq.s32.totalorder %s3236_s28, 0  ;;  %p434_p3 = scmp.eq.s32.totalorder %s2230_s29, 1 }
  0x1a   : > { %p2231_p5 = scmp.ge.s32.totalorder %s3107_s27, 1  ;;  %p441_p7 = scmp.lt.s32.totalorder %s3107_s27, 3 }
  0x1b   : > { %p3245_p4 = por %p3840_p1, %p58_p0  ;;  %p3250_p6 = por %p434_p3, %p58_p0 }
  0x1c   : > { %p3255_p8 = pnand %p2231_p5, %p441_p7  ;;  %s3109_s19 = smov [#allocation7]  }
  0x1d   : > { %s3861_s0 = scalar_select %p3245_p4, 1, 0 }
  0x1e   : > { %s3862_s30 = scalar_select %p3250_p6, 1, 0 }
  0x1f   : > { %s3864_s18 = scalar_select %p3255_p8, 1, 0 }
  0x20   : > { %3863 = sst [smem:[#allocation21_spill]] %s3862_s30  ;;  %s453_s1 = sshll.u32 %s3109_s19, 4  ;;  %s3259_s1 = int_to_ptr.vmem [resolvable:$true] %s453_s1 }
  0x21   : > { %p2710_p9 = pneg %p3255_p8  ;;  %s3110_s21 = smov [#allocation8]  }
  0x22   : > { %s475_s22 = sshll.u32 %s3110_s21, 4  ;;  %s3111_s23 = smov [#allocation10]   ;;  %s3270_s22 = int_to_ptr.vmem [resolvable:$true] %s475_s22 }
  0x23   : > { %p3266_p11 = pnand %p2710_p9, %p3840_p1  ;;  %s3272_s29 = sshll.u32 %s3111_s23, 4  ;;  %s498_s29 = int_to_ptr.vmem [resolvable:$true] %s3272_s29 }
  0x24   : > { %s3866_s3 = sld [smem:[#allocation26_spill]] }
  0x25   : > { %p3282_p13 = pneg %p3266_p11 }
  0x2a   : > { %s2853_s24 = scalar_lea.hbm %s3866_s3, 1024 }
  0x2b   : > { %p2854_p12 = scmp.ne.s32.totalorder %s3866_s3, %s2853_s24  ;;  %p2860_p5 = scmp.lt.u32.totalorder %s2853_s24, %s3866_s3 }
  0x2d   : > { %p2856_p0 = pnand %p3282_p13, %p2854_p12 }
  0x2f   : > { %p2857_p3 = pneg %p2856_p0 }
  0x31   : > { %p2862_p7 = pnand %p2860_p5, %p2857_p3 }
  0x33   : > { %2865 = shalt.err (!%p2862_p7)
}
  0x34   : > { %s2866_s16 = scalar_lea.vmem %s3259_s1, 1024  ;;  %p2874_p2 = scmp.lt.s32.totalorder %s3259_s1, %s3259_s1 }
  0x35   : > { %p2867_p9 = scmp.ne.s32.totalorder %s3259_s1, %s2866_s16  ;;  %p2875_p6 = scmp.lt.s32.totalorder %s2866_s16, %s2866_s16 }
  0x37   : > { %p2869_p10 = pnand %p2867_p9, %p3282_p13  ;;  %p2876_p12 = por %p2875_p6, %p2874_p2 }
  0x39   : > { %p2870_p1 = pneg %p2869_p10 }
  0x3b   : > { %p2877_p0 = pnand %p2876_p12, %p2870_p1 }
  0x3d   : > { %2880 = shalt.err (!%p2877_p0)
}
  0x3e   : > { %s3843_s17 = smov 64   ;;  %s3845_s24 = smov 4  }
  0x3f   : > { %2713 = dma.hbm_to_vmem [thread:$0]  (!%p3266_p11), %s3866_s3, 1024, %s3259_s1, [#allocation6], %s3843_s17, %s3843_s17, %s3845_s24  }
  0x40   : > { %s3868_s7 = sld [smem:[#allocation27_spill]] }
  0x46   : > { %s2881_s16 = scalar_lea.hbm %s3868_s7, 1024 }
  0x47   : > { %p2882_p1 = scmp.ne.s32.totalorder %s3868_s7, %s2881_s16  ;;  %p2888_p10 = scmp.lt.u32.totalorder %s2881_s16, %s3868_s7 }
  0x49   : > { %p2884_p2 = pnand %p2882_p1, %p3282_p13 }
  0x4b   : > { %p2885_p6 = pneg %p2884_p2 }
  0x4d   : > { %p2890_p3 = pnand %p2888_p10, %p2885_p6 }
  0x4f   : > { %2893 = shalt.err (!%p2890_p3)
}
  0x50   : > { %s2894_s1 = scalar_lea.vmem %s3270_s22, 1024  ;;  %p2902_p12 = scmp.lt.s32.totalorder %s3270_s22, %s3270_s22 }
  0x51   : > { %p2895_p5 = scmp.ne.s32.totalorder %s3270_s22, %s2894_s1  ;;  %p2903_p0 = scmp.lt.s32.totalorder %s2894_s1, %s2894_s1 }
  0x53   : > { %p2897_p7 = pnand %p2895_p5, %p3282_p13  ;;  %p2904_p1 = por %p2903_p0, %p2902_p12 }
  0x55   : > { %p2898_p9 = pneg %p2897_p7 }
  0x57   : > { %p2905_p2 = pnand %p2904_p1, %p2898_p9 }
  0x59   : > { %2908 = shalt.err (!%p2905_p2)
}
  0x5a   : > { %2716 = dma.hbm_to_vmem [thread:$0]  (!%p3266_p11), %s3868_s7, 1024, %s3270_s22, [#allocation9], %s3843_s17, %s3843_s17, %s3845_s24  }
  0x5b   : > { %s3869_s11 = sld [smem:[#allocation29_spill]] }
  0x61   : > { %s2909_s30 = scalar_lea.hbm %s3869_s11, 1024 }
  0x62   : > { %p2910_p6 = scmp.ne.s32.totalorder %s3869_s11, %s2909_s30  ;;  %p2916_p5 = scmp.lt.u32.totalorder %s2909_s30, %s3869_s11 }
  0x64   : > { %p2912_p10 = pnand %p2910_p6, %p3282_p13 }
  0x66   : > { %p2913_p3 = pneg %p2912_p10 }
  0x68   : > { %p2918_p7 = pnand %p2916_p5, %p2913_p3 }
  0x6a   : > { %2921 = shalt.err (!%p2918_p7)
}
  0x6b   : > { %s2922_s1 = scalar_lea.vmem %s498_s29, 1024  ;;  %p2930_p1 = scmp.lt.s32.totalorder %s498_s29, %s498_s29 }
  0x6c   : > { %p2923_p9 = scmp.ne.s32.totalorder %s498_s29, %s2922_s1  ;;  %p2931_p2 = scmp.lt.s32.totalorder %s2922_s1, %s2922_s1 }
  0x6e   : > { %p2925_p12 = pnand %p2923_p9, %p3282_p13  ;;  %p2932_p4 = por %p2931_p2, %p2930_p1 }
  0x70   : > { %p2926_p0 = pneg %p2925_p12 }
  0x72   : > { %p2933_p8 = pnand %p2932_p4, %p2926_p0 }
  0x74   : > { %2936 = shalt.err (!%p2933_p8)
}
  0x75   : > { %2719 = dma.hbm_to_vmem [thread:$0]  (!%p3266_p11), %s3869_s11, 1024, %s498_s29, [#allocation9], %s3843_s17, %s3843_s17, %s3845_s24  }
  0x76   : > { %s3114_s12 = smov [#allocation11]   ;;  %s3870_s15 = sld [smem:[#allocation33_spill]] }
  0x77   : > { %s519_s13 = sshll.u32 %s3114_s12, 4  ;;  %s520_s13 = int_to_ptr.vmem [resolvable:$true] %s519_s13 }
  0x7c   : > { %s2937_s19 = scalar_lea.hbm %s3870_s15, 2048 }
  0x7d   : > { %p2938_p4 = scmp.ne.s32.totalorder %s3870_s15, %s2937_s19  ;;  %p2944_p10 = scmp.lt.u32.totalorder %s2937_s19, %s3870_s15 }
  0x7f   : > { %p2940_p8 = pnand %p2938_p4, %p3282_p13 }
  0x81   : > { %p2941_p6 = pneg %p2940_p8 }
  0x83   : > { %p2946_p3 = pnand %p2944_p10, %p2941_p6 }
  0x85   : > { %2949 = shalt.err (!%p2946_p3)
}
  0x86   : > { %s2950_s29 = scalar_lea.vmem %s520_s13, 2048  ;;  %p2958_p12 = scmp.lt.s32.totalorder %s520_s13, %s520_s13 }
  0x87   : > { %p2951_p5 = scmp.ne.s32.totalorder %s520_s13, %s2950_s29  ;;  %p2959_p0 = scmp.lt.s32.totalorder %s2950_s29, %s2950_s29 }
  0x89   : > { %p2953_p7 = pnand %p2951_p5, %p3282_p13  ;;  %p2960_p1 = por %p2959_p0, %p2958_p12 }
  0x8b   : > { %p2954_p9 = pneg %p2953_p7 }
  0x8d   : > { %p2961_p2 = pnand %p2960_p1, %p2954_p9 }
  0x8f   : > { %2964 = shalt.err (!%p2961_p2)
}
  0x90   : > { %s3115_s22 = smov 128   ;;  %s3116_s2 = smov 8  }
  0x91   : > { %2722 = dma.hbm_to_vmem [thread:$0]  (!%p3266_p11), %s3870_s15, 2048, %s520_s13, [#allocation12], %s3115_s22, %s3115_s22, %s3116_s2  }
  0x92   : > { %s3373_s14 = sadd.s32 1, %s3107_s27   ;;  %s45_s19 = sadd.s32 1, %s3103_s26 }
  0x93   : > { %s42_s30 = ssub.s32 %s3107_s27, %s3373_s14  ;;  %p52_p4 = scmp.ne.s32.totalorder %s3103_s26, %s3099_s25 }
  0x94   : > { %p43_p13 = scmp.eq.s32.totalorder %s42_s30, 0  ;;  %p53_p8 = scmp.eq.s32.totalorder %s3107_s27, 0 }
  0x95   : > { %p3872_p10 = scmp.eq.s32.totalorder %s3236_s28, 1  ;;  %p2738_p5 = scmp.lt.s32.totalorder %s3107_s27, 2 }
  0x96   : > { %s3382_s21 = scalar_select %p43_p13, %s3103_s26, %s45_s19  }
  0x97   : > { %p54_p6 = por %p53_p8, %p52_p4  ;;  %p3386_p3 = por %p3872_p10, %p52_p4 }
  0x98   : > { %3871 = sst [smem:[#allocation22_spill]] %s3382_s21  ;;  %s536_s20 = sand.u32 1, %s3103_s26  }
  0x99   : > { %s2237_s16 = sshll.u32 %s536_s20, 6  ;;  %s2321_s13 = sshll.u32 %s3107_s27, 10 }
  0x9a   : > { %s3874_s22 = sld [smem:[#allocation23_spill]]  ;;  %s540_s10 = scalar_lea.vmem [#allocation2], %s2237_s16 }
  0x9b   : > { %s547_s12 = sshll.u32 %s540_s10, 4  ;;  %p3400_p11 = pnand %p2738_p5, %p54_p6  ;;  %s3398_s12 = int_to_ptr.vmem [resolvable:$true] %s547_s12 }
  0x9c   : > { %s3876_s24 = sld [smem:[#allocation24_spill]]  ;;  %s561_s29 = scalar_lea.vmem [#allocation5], %s2237_s16 }
  0x9d   : > { %s3409_s7 = sshll.u32 %s561_s29, 4  ;;  %s3411_s11 = scalar_lea.sflag [#allocation3], %s536_s20  ;;  %s3443_s7 = int_to_ptr.vmem [resolvable:$true] %s3409_s7 }
  0x9e   : > { %p2967_p9 = pneg %p3400_p11 }
  0xa0   : > { %s3396_s2 = scalar_lea.hbm %s3874_s22, %s2321_s13  ;;  %s2970_s17 = scalar_lea.hbm %s3874_s22, 2048 }
  0xa1   : > { %s2965_s10 = scalar_lea.hbm %s3396_s2, 1024  ;;  %p2971_p1 = scmp.lt.u32.totalorder %s3396_s2, %s3874_s22 }
  0xa2   : > { %s3877_s3 = smov %s3876_s24  ;;  %s3407_s1 = scalar_lea.hbm %s3876_s24, %s2321_s13 }
  0xa3   : > { %p2966_p7 = scmp.ne.s32.totalorder %s3396_s2, %s2965_s10  ;;  %p2972_p2 = scmp.lt.u32.totalorder %s2970_s17, %s2965_s10 }
  0xa4   : > { %p2974_p4 = scmp.lt.u32.totalorder %s2965_s10, %s3396_s2 }
  0xa5   : > { %p2968_p12 = pnand %p2967_p9, %p2966_p7  ;;  %p2973_p13 = por %p2972_p2, %p2971_p1 }
  0xa7   : > { %p2969_p0 = pneg %p2968_p12  ;;  %p2975_p8 = por %p2974_p4, %p2973_p13 }
  0xa9   : > { %p2976_p6 = pnand %p2975_p8, %p2969_p0 }
  0xab   : > { %2979 = shalt.err (!%p2976_p6)
}
  0xac   : > { %s2980_s20 = scalar_lea.vmem %s3398_s12, 1024  ;;  %s3117_s15 = smov [#allocation2]  }
  0xad   : > { %p2981_p10 = scmp.ne.s32.totalorder %s3398_s12, %s2980_s20  ;;  %s2985_s21 = sshll.u32 %s3117_s15, 4  ;;  %s2986_s21 = int_to_ptr.vmem [resolvable:$false] %s2985_s21 }
  0xae   : > { %s2987_s16 = scalar_lea.vmem %s2986_s21, 2048  ;;  %p2988_p12 = scmp.lt.s32.totalorder %s3398_s12, %s2986_s21 }
  0xaf   : > { %p2983_p5 = pnand %p2981_p10, %p2967_p9  ;;  %p2989_p1 = scmp.lt.s32.totalorder %s2987_s16, %s2980_s20 }
  0xb1   : > { %p2984_p7 = pneg %p2983_p5  ;;  %p2990_p2 = por %p2989_p1, %p2988_p12 }
  0xb3   : > { %p2991_p13 = pnand %p2990_p2, %p2984_p7 }
  0xb5   : > { %2994 = shalt.err (!%p2991_p13)
}
  0xb6   : > { %s3878_s13 = smov 4   ;;  %s3879_s29 = smov 64  }
  0xb7   : > { %2726 = dma.hbm_to_vmem [thread:$0]  (!%p3400_p11), %s3396_s2, 1024, %s3398_s12, %s3411_s11, %s3879_s29, %s3879_s29, %s3878_s13  }
  0xb8   : > { %s557_s10 = sand.u32 1, %s3107_s27   ;;  %s2995_s19 = scalar_lea.hbm %s3407_s1, 1024 }
  0xb9   : > { %s3446_s17 = scalar_lea.sflag [#allocation6], %s557_s10  ;;  %p2996_p0 = scmp.ne.s32.totalorder %s3407_s1, %s2995_s19 }
  0xba   : > { %s3000_s15 = scalar_lea.hbm %s3877_s3, 2048  ;;  %p3001_p6 = scmp.lt.u32.totalorder %s3407_s1, %s3877_s3 }
  0xbb   : > { %p2998_p4 = pnand %p2996_p0, %p2967_p9  ;;  %p3002_p10 = scmp.lt.u32.totalorder %s3000_s15, %s2995_s19 }
  0xbc   : > { %p3004_p7 = scmp.lt.u32.totalorder %s2995_s19, %s3407_s1 }
  0xbd   : > { %p2999_p8 = pneg %p2998_p4  ;;  %p3003_p5 = por %p3002_p10, %p3001_p6 }
  0xbf   : > { %p3005_p12 = por %p3004_p7, %p3003_p5 }
  0xc1   : > { %p3006_p1 = pnand %p3005_p12, %p2999_p8 }
  0xc3   : > { %3009 = shalt.err (!%p3006_p1)
}
  0xc4   : > { %s3010_s11 = scalar_lea.vmem %s3443_s7, 1024  ;;  %s3118_s2 = smov [#allocation5]  }
  0xc5   : > { %p3011_p2 = scmp.ne.s32.totalorder %s3443_s7, %s3010_s11  ;;  %s3015_s12 = sshll.u32 %s3118_s2, 4  ;;  %s3016_s12 = int_to_ptr.vmem [resolvable:$false] %s3015_s12 }
  0xc6   : > { %s3017_s10 = scalar_lea.vmem %s3016_s12, 2048  ;;  %p3018_p4 = scmp.lt.s32.totalorder %s3443_s7, %s3016_s12 }
  0xc7   : > { %p3013_p13 = pnand %p3011_p2, %p2967_p9  ;;  %p3019_p6 = scmp.lt.s32.totalorder %s3017_s10, %s3010_s11 }
  0xc9   : > { %p3014_p0 = pneg %p3013_p13  ;;  %p3020_p10 = por %p3019_p6, %p3018_p4 }
  0xcb   : > { %p3021_p5 = pnand %p3020_p10, %p3014_p0 }
  0xcd   : > { %3024 = shalt.err (!%p3021_p5)
}
  0xce   : > { %2729 = dma.hbm_to_vmem [thread:$0]  (!%p3400_p11), %s3407_s1, 1024, %s3443_s7, %s3446_s17, %s3879_s29, %s3879_s29, %s3878_s13  }
  0xcf   : > { %p3880_p9 = scmp.ne.s32.totalorder %s3864_s18, 0 }
  0xd0   : > { %s3478_s19 = sand.u32 (!%p3880_p9), 1, %s3099_s25   ;;  %p3881_p8 = scmp.ne.s32.totalorder (!%p3880_p9), %s3861_s0, 0 }
  0xd1   : > { %586 = sbr.rel (%p3880_p9) target bundleno = 2169 (0x879), region = 88  ;;  %s2244_s24 = sshll.u32 (!%p3880_p9), %s3478_s19, 6 }
  0xd2   : > { %s589_s20 = scalar_lea.sflag (!%p3880_p9), [#allocation3], %s3478_s19  ;;  %s3482_s15 = scalar_lea.vmem (!%p3880_p9), [#allocation2], %s2244_s24 }
  0xd8   : > { %3070 = dma.done.wait (%p3881_p8), %s589_s20, 1024  }
  0xd9   : > { %3072 = vsyncadd (%p3881_p8), %s589_s20, 4294966272  ;;  %s597_s7 = sand.u32 1, %s3236_s28   ;;  %s3489_s30 = scalar_lea.vmem [#allocation5], %s2244_s24 }
  0xda   : > { %s598_s18 = scalar_lea.sflag [#allocation6], %s597_s7 }
  0xdb   : > { %3074 = dma.done.wait (%p3881_p8), %s598_s18, 1024  }
  0xdc   : > { %3076 = vsyncadd (%p3881_p8), %s598_s18, 4294966272  ;;  %p3882_p11 = scmp.eq.s32.totalorder %s3236_s28, 0 }
  0xde   : > { %3078 = dma.done.wait (%p3882_p11), [#allocation6], 1024   ;;  %p3883_p7 = pmov %p3882_p11 }
  0xe0   : > { %3080 = vsyncadd (%p3883_p7), [#allocation6], 4294966272  ;;  %p3884_p12 = pmov %p3883_p7 }
  0xe1   : > { %p3885_p1 = pmov %p3883_p7 }
  0xe2   : > { %3082 = dma.done.wait (%p3884_p12), [#allocation9], 2048  }
  0xe3   : > { %3084 = vsyncadd (%p3885_p1), [#allocation9], 4294965248  ;;  %p3886_p2 = pmov %p3885_p1 }
  0xe4   : > { %p3887_p13 = pmov %p3885_p1 }
  0xe5   : > { %3086 = dma.done.wait (%p3886_p2), [#allocation12], 2048  }
  0xe6   : > { %3088 = vsyncadd (%p3887_p13), [#allocation12], 4294965248  ;;  %v2789_v0 = vld [vmem:[#allocation7] sm:$0xff]   ;;  %v2790_v1 = vld [vmem:[#allocation7 + $0x8] sm:$0xff]   ;;  %s3888_s20 = sld [smem:[#allocation28_spill]]  ;;  %vm3120_vm0 = vmmov 0  }
  0xe7   : > { %2437 = vmatprep.subr.bf16.mxu0 %v2789_v0  ;;  %v2791_v2 = vld [vmem:[#allocation7 + $0x10] sm:$0xff]   ;;  %v2792_v3 = vld [vmem:[#allocation7 + $0x18] sm:$0xff]   ;;  %v2797_v4 = vld [vmem:[%s3489_s30] sm:$0xff]   ;;  %s3889_s18 = sld [smem:[#allocation30_spill]]  ;;  %s3890_s1 = sld [smem:[#allocation31_spill]] }
  0xe8   : > { %2438 = vmatpush3.bf16.msra.mxu0 %v2789_v0  ;;  %2453 = vmatprep.mubr.bf16.mxu0 %v2797_v4  ;;  %v2793_v5 = vld [vmem:[#allocation7 + $0x20] sm:$0xff]   ;;  %v2794_v6 = vld [vmem:[#allocation7 + $0x28] sm:$0xff]   ;;  %v2795_v7 = vld [vmem:[#allocation7 + $0x30] sm:$0xff]   ;;  %s3891_s17 = sld [smem:[#allocation32_spill]]  ;;  %p676_p0 = scmp.lt.s32.totalorder %s3236_s28, 1 }
  0xe9   : > { %2439 = vmatprep.subr.bf16.mxu0 %v2790_v1  ;;  %v2796_v8 = vld [vmem:[#allocation7 + $0x38] sm:$0xff]   ;;  %v2798_v9 = vld [vmem:[%s3489_s30 + $0x8] sm:$0xff]   ;;  %v2799_v10 = vld [vmem:[%s3489_s30 + $0x10] sm:$0xff]   ;;  %s3892_s2 = sld [smem:[#allocation25_spill]]  ;;  %s2323_s7 = sshll.u32 %s3236_s28, 5 }
  0xea   : > { %v2800_v11 = vld [vmem:[%s3489_s30 + $0x18] sm:$0xff]   ;;  %v2801_v12 = vld [vmem:[%s3489_s30 + $0x20] sm:$0xff]   ;;  %v2802_v13 = vld [vmem:[%s3489_s30 + $0x28] sm:$0xff]   ;;  %s677_s21 = scalar_select %p676_p0, %s3236_s28, 1 }
  0xeb   : > { %v2803_v14 = vld [vmem:[%s3489_s30 + $0x30] sm:$0xff]   ;;  %v2804_v15 = vld [vmem:[%s3489_s30 + $0x38] sm:$0xff]   ;;  %v3516_v16 = vld [vmem:[%s3482_s15] sm:$0xff]   ;;  %s3894_s13 = sld [smem:[#allocation35_spill]]  ;;  %s3124_s28 = smov [#allocation13]  }
  0xec   : > { %2440 = vmatpush3.bf16.msra.mxu0 %v2790_v1  ;;  %2485 = vmatprep.mubr.bf16.mxu1 %v3516_v16  ;;  %v2813_v17 = vld [vmem:[#allocation8] sm:$0xff]   ;;  %v2814_v18 = vld [vmem:[#allocation8 + $0x8] sm:$0xff]   ;;  %v2815_v19 = vld [vmem:[#allocation8 + $0x10] sm:$0xff]   ;;  %s3029_s16 = sshll.u32 %s3124_s28, 4  ;;  %s3030_s16 = int_to_ptr.vmem [resolvable:$false] %s3029_s16 }
  0xed   : > { %2441 = vmatprep.subr.bf16.mxu0 %v2791_v2  ;;  %v2816_v20 = vld [vmem:[#allocation8 + $0x18] sm:$0xff]   ;;  %v2817_v21 = vld [vmem:[#allocation8 + $0x20] sm:$0xff]   ;;  %v3520_v46 = vld [vmem:[%s3482_s15 + $0x8] sm:$0xff]   ;;  %s3031_s11 = scalar_lea.vmem %s3030_s16, 64 }
  0xee   : > { %v3523_v47 = vld [vmem:[%s3482_s15 + $0x10] sm:$0xff]   ;;  %v3528_v48 = vld [vmem:[%s3482_s15 + $0x18] sm:$0xff]   ;;  %v3531_v49 = vld [vmem:[%s3482_s15 + $0x20] sm:$0xff]  }
  0xef   : > { %v3536_v50 = vld [vmem:[%s3482_s15 + $0x28] sm:$0xff]   ;;  %v3539_v51 = vld [vmem:[%s3482_s15 + $0x30] sm:$0xff]   ;;  %v3544_v52 = vld [vmem:[%s3482_s15 + $0x38] sm:$0xff]   ;;  %s678_s12 = scalar_lea.vmem %s3892_s2, %s677_s21  ;;  %s2250_s15 = sshll.u32 %s3478_s19, 1 }
  0xf0   : > { %2442 = vmatpush3.bf16.msra.mxu0 %v2791_v2  ;;  %v2818_v53 = vld [vmem:[#allocation8 + $0x28] sm:$0xff]   ;;  %v2819_v54 = vld [vmem:[#allocation8 + $0x30] sm:$0xff]   ;;  %v2820_v55 = vld [vmem:[#allocation8 + $0x38] sm:$0xff]  }
  0xf1   : > { %2443 = vmatprep.subr.bf16.mxu0 %v2792_v3  ;;  %v3551_v56 = vld [vmem:[%s3821_s4] ss:$0 sm:$0xff]  ;;  %s3773_s29 = scalar_lea.hbm %s3894_s13, %s2323_s7 }
  0xf2   : > { %v3556_v58 = vld [vmem:[%s3822_s5] ss:$0 sm:$0xff] }
  0xf3   : > { %v3562_v61 = vld [vmem:[%s3823_s6] ss:$0 sm:$0xff] }
  0xf4   : > { %2444 = vmatpush3.bf16.msra.mxu0 %v2792_v3 }
  0xf5   : > { %2445 = vmatprep.subr.bf16.mxu0 %v2793_v5 }
  0xf8   : > { %2446 = vmatpush3.bf16.msra.mxu0 %v2793_v5 }
  0xf9   : > { %2447 = vmatprep.subr.bf16.mxu0 %v2794_v6 }
  0xfc   : > { %2448 = vmatpush3.bf16.msra.mxu0 %v2794_v6 }
  0xfd   : > { %2449 = vmatprep.subr.bf16.mxu0 %v2795_v7 }
 0x100   : > { %2450 = vmatpush3.bf16.msra.mxu0 %v2795_v7 }
 0x101   : > { %2451 = vmatprep.subr.bf16.mxu0 %v2796_v8 }
 0x104   : > { %2452 = vmatpush3.bf16.msra.mxu0 %v2796_v8 }
 0x105   : > { %2501 = vmatprep.subr.bf16.mxu0 %v2813_v17 }
 0x107   : > { %2454 = vmatmul.mubr.bf16.vlgmr.msra.gmra.mrb[0].mxu0 %v2798_v9 }
 0x108   : > { %2457 = vmatprep.mubr.bf16.mxu0 %v2799_v10  ;;  %2502 = vmatpush3.bf16.msra.mxu0 %v2813_v17 }
 0x109   : > { %2503 = vmatprep.subr.bf16.mxu0 %v2814_v18 }
 0x10c   : > { %2504 = vmatpush3.bf16.msra.mxu0 %v2814_v18 }
 0x10d   : > { %2505 = vmatprep.subr.bf16.mxu0 %v2815_v19 }
 0x10f   : > { %2458 = vmatmul.mubr.bf16.gmra.mrb[4].mxu0 %v2800_v11 }
 0x110   : > { %2461 = vmatprep.mubr.bf16.mxu0 %v2801_v12  ;;  %2506 = vmatpush3.bf16.msra.mxu0 %v2815_v19 }
 0x111   : > { %2507 = vmatprep.subr.bf16.mxu0 %v2816_v20 }
 0x114   : > { %2508 = vmatpush3.bf16.msra.mxu0 %v2816_v20 }
 0x115   : > { %2509 = vmatprep.subr.bf16.mxu0 %v2817_v21 }
 0x117   : > { %2462 = vmatmul.mubr.bf16.gmra.mrb[8].mxu0 %v2802_v13 }
 0x118   : > { %2465 = vmatprep.mubr.bf16.mxu0 %v2803_v14  ;;  %2510 = vmatpush3.bf16.msra.mxu0 %v2817_v21 }
 0x119   : > { %2511 = vmatprep.subr.bf16.mxu0 %v2818_v53 }
 0x11c   : > { %2512 = vmatpush3.bf16.msra.mxu0 %v2818_v53 }
 0x11d   : > { %2513 = vmatprep.subr.bf16.mxu0 %v2819_v54 }
 0x11f   : > { %2466 = vmatmul.mubr.bf16.gmra.mrb[12].mxu0 %v2804_v15 }
 0x120   : > { %2514 = vmatpush3.bf16.msra.mxu0 %v2819_v54 }
 0x121   : > { %2515 = vmatprep.subr.bf16.mxu0 %v2820_v55 }
 0x124   : > { %2516 = vmatpush3.bf16.msra.mxu0 %v2820_v55 }
 0x1da   : > { %v2455_v22 = vpop.f32.mrb[0].mxu0 }
 0x1db   : > { %v858_v23 = vpop.f32.mrb[1].mxu0 }
 0x1dc   : > { %v2456_v24 = vpop.f32.mrb[2].mxu0 }
 0x1dd   : > { %v922_v25 = vpack.c.bf16 %v2456_v24, %v2455_v22  ;;  %v861_v26 = vpop.f32.mrb[3].mxu0 }
 0x1de   : > { %v921_v27 = vpack.c.bf16 %v861_v26, %v858_v23 }
 0x1e0   : > { %2469 = vmatprep.subr.bf16.mxu1 %v921_v27 }
 0x1e1   : > { %2470 = vmatpush3.bf16.msra.mxu1 %v921_v27 }
 0x1e2   : > { %v2459_v28 = vpop.f32.mrb[4].mxu0  ;;  %2471 = vmatprep.subr.bf16.mxu1 %v922_v25 }
 0x1e3   : > { %v874_v29 = vpop.f32.mrb[5].mxu0 }
 0x1e4   : > { %v2460_v30 = vpop.f32.mrb[6].mxu0 }
 0x1e5   : > { %v924_v31 = vpack.c.bf16 %v2460_v30, %v2459_v28  ;;  %v877_v32 = vpop.f32.mrb[7].mxu0  ;;  %2472 = vmatpush3.bf16.msra.mxu1 %v922_v25 }
 0x1e6   : > { %v923_v33 = vpack.c.bf16 %v877_v32, %v874_v29 }
 0x1e8   : > { %2473 = vmatprep.subr.bf16.mxu1 %v923_v33 }
 0x1e9   : > { %2474 = vmatpush3.bf16.msra.mxu1 %v923_v33 }
 0x1ea   : > { %v2463_v34 = vpop.f32.mrb[8].mxu0  ;;  %2475 = vmatprep.subr.bf16.mxu1 %v924_v31 }
 0x1eb   : > { %v890_v35 = vpop.f32.mrb[9].mxu0 }
 0x1ec   : > { %v2464_v36 = vpop.f32.mrb[10].mxu0 }
 0x1ed   : > { %v926_v37 = vpack.c.bf16 %v2464_v36, %v2463_v34  ;;  %v893_v38 = vpop.f32.mrb[11].mxu0  ;;  %2476 = vmatpush3.bf16.msra.mxu1 %v924_v31 }
 0x1ee   : > { %v925_v39 = vpack.c.bf16 %v893_v38, %v890_v35 }
 0x1f0   : > { %2477 = vmatprep.subr.bf16.mxu1 %v925_v39 }
 0x1f1   : > { %2478 = vmatpush3.bf16.msra.mxu1 %v925_v39 }
 0x1f2   : > { %v2467_v40 = vpop.f32.mrb[12].mxu0  ;;  %2479 = vmatprep.subr.bf16.mxu1 %v926_v37 }
 0x1f3   : > { %v906_v41 = vpop.f32.mrb[13].mxu0 }
 0x1f4   : > { %v2468_v42 = vpop.f32.mrb[14].mxu0 }
 0x1f5   : > { %v928_v43 = vpack.c.bf16 %v2468_v42, %v2467_v40  ;;  %v909_v44 = vpop.f32.mrb[15].mxu0  ;;  %2480 = vmatpush3.bf16.msra.mxu1 %v926_v37 }
 0x1f6   : > { %v927_v45 = vpack.c.bf16 %v909_v44, %v906_v41 }
 0x1f8   : > { %2481 = vmatprep.subr.bf16.mxu1 %v927_v45 }
 0x1f9   : > { %2482 = vmatpush3.bf16.msra.mxu1 %v927_v45 }
 0x1fa   : > { %2483 = vmatprep.subr.bf16.mxu1 %v928_v43 }
 0x1fd   : > { %2484 = vmatpush3.bf16.msra.mxu1 %v928_v43 }
 0x200   : > { %2486 = vmatmul.mubr.bf16.vlgmr.msra.gmra.mrb[0].mxu1 %v3520_v46 }
 0x201   : > { %2489 = vmatprep.mubr.bf16.mxu1 %v3523_v47 }
 0x208   : > { %2490 = vmatmul.mubr.bf16.gmra.mrb[4].mxu1 %v3528_v48 }
 0x209   : > { %2493 = vmatprep.mubr.bf16.mxu1 %v3531_v49 }
 0x210   : > { %2494 = vmatmul.mubr.bf16.gmra.mrb[8].mxu1 %v3536_v50 }
 0x211   : > { %2497 = vmatprep.mubr.bf16.mxu1 %v3539_v51 }
 0x218   : > { %2498 = vmatmul.mubr.bf16.gmra.mrb[12].mxu1 %v3544_v52 }
 0x219   : > { %2549 = vmatprep.mubr.bf16.mxu1 %v3516_v16 }
 0x2d3   : > { %v2487_v57 = vpop.f32.mrb[0].mxu1 }
 0x2d4   : > { %v1027_v59 = vadd.f32 %v2487_v57, %v3551_v56  ;;  %v1018_v60 = vpop.f32.mrb[1].mxu1 }
 0x2d5   : > { %v1019_v62 = vadd.f32 %v3551_v56, %v1018_v60  ;;  %v2488_v63 = vpop.f32.mrb[2].mxu1 }
 0x2d6   : > { %v1090_v0 = vmul.f32 %v3556_v58, %v1027_v59  ;;  %v1030_v1 = vadd.f32 %v2488_v63, %v3551_v56  ;;  %v1021_v2 = vpop.f32.mrb[3].mxu1 }
 0x2d7   : > { %v1088_v3 = vmul.f32 %v3556_v58, %v1019_v62  ;;  %v1022_v4 = vadd.f32 %v3551_v56, %v1021_v2 }
 0x2d8   : > { %v1113_v5 = vadd.f32 %v3562_v61, %v1090_v0  ;;  %v1091_v6 = vmul.f32 %v3556_v58, %v1030_v1 }
 0x2d9   : > { %v1111_v7 = vadd.f32 %v3562_v61, %v1088_v3  ;;  %v1089_v8 = vmul.f32 %v3556_v58, %v1022_v4 }
 0x2da   : > { %v1114_v9 = vadd.f32 %v3562_v61, %v1091_v6  ;;  %v1129_v12 = vmax.f32 %v1113_v5, 0.0 }
 0x2db   : > { %v1112_v10 = vadd.f32 %v3562_v61, %v1089_v8  ;;  %v2491_v11 = vpop.f32.mrb[4].mxu1  ;;  %v1127_v17 = vmax.f32 %v1111_v7, 0.0 }
 0x2dc   : > { %v1130_v13 = vmax.f32 %v1114_v9, 0.0  ;;  %v1043_v14 = vadd.f32 %v2491_v11, %v3551_v56  ;;  %v1034_v15 = vpop.f32.mrb[5].mxu1 }
 0x2dd   : > { %v1128_v18 = vmax.f32 %v1112_v10, 0.0  ;;  %v1035_v19 = vadd.f32 %v3551_v56, %v1034_v15  ;;  %v2492_v20 = vpop.f32.mrb[6].mxu1 }
 0x2de   : > { %v1144_v21 = vpack.c.bf16 %v1130_v13, %v1129_v12  ;;  %v1094_v22 = vmul.f32 %v3556_v58, %v1043_v14  ;;  %v1046_v23 = vadd.f32 %v2492_v20, %v3551_v56  ;;  %v1037_v24 = vpop.f32.mrb[7].mxu1 }
 0x2df   : > { %v1092_v25 = vmul.f32 %v3556_v58, %v1035_v19  ;;  %v1038_v26 = vadd.f32 %v3551_v56, %v1037_v24  ;;  %v1143_v27 = vpack.c.bf16 %v1128_v18, %v1127_v17 }
 0x2e0   : > { %v1117_v28 = vadd.f32 %v3562_v61, %v1094_v22  ;;  %v1095_v29 = vmul.f32 %v3556_v58, %v1046_v23 }
 0x2e1   : > { %v1115_v30 = vadd.f32 %v3562_v61, %v1092_v25  ;;  %v1093_v31 = vmul.f32 %v3556_v58, %v1038_v26  ;;  %2517 = vmatprep.mubr.bf16.mxu0 %v1143_v27 }
 0x2e2   : > { %v1118_v32 = vadd.f32 %v3562_v61, %v1095_v29  ;;  %2518 = vmatmul.mubr.bf16.vlgmr.msra.gmra.mrb[16].mxu0 %v1144_v21  ;;  %v1133_v35 = vmax.f32 %v1117_v28, 0.0 }
 0x2e3   : > { %v1116_v33 = vadd.f32 %v3562_v61, %v1093_v31  ;;  %v2495_v34 = vpop.f32.mrb[8].mxu1  ;;  %v1131_v39 = vmax.f32 %v1115_v30, 0.0  ;;  %v2821_v30 = vld [vmem:[#allocation10] sm:$0xff]   ;;  %v2822_v31 = vld [vmem:[#allocation10 + $0x8] sm:$0xff]  }
 0x2e4   : > { %v1134_v36 = vmax.f32 %v1118_v32, 0.0  ;;  %v1059_v37 = vadd.f32 %v2495_v34, %v3551_v56  ;;  %v1050_v38 = vpop.f32.mrb[9].mxu1  ;;  %2565 = vmatprep.subr.bf16.mxu0 %v2821_v30  ;;  %v2824_v32 = vld [vmem:[#allocation10 + $0x18] sm:$0xff]  }
 0x2e5   : > { %v1132_v40 = vmax.f32 %v1116_v33, 0.0  ;;  %v1051_v41 = vadd.f32 %v3551_v56, %v1050_v38  ;;  %v2496_v42 = vpop.f32.mrb[10].mxu1  ;;  %2566 = vmatpush3.bf16.msra.mxu0 %v2821_v30 }
 0x2e6   : > { %v1098_v43 = vmul.f32 %v3556_v58, %v1059_v37  ;;  %v1062_v44 = vadd.f32 %v2496_v42, %v3551_v56  ;;  %v1053_v45 = vpop.f32.mrb[11].mxu1  ;;  %v1146_v53 = vpack.c.bf16 %v1134_v36, %v1133_v35  ;;  %2567 = vmatprep.subr.bf16.mxu0 %v2822_v31 }
 0x2e7   : > { %v1096_v54 = vmul.f32 %v3556_v58, %v1051_v41  ;;  %v1054_v55 = vadd.f32 %v3551_v56, %v1053_v45  ;;  %v1145_v57 = vpack.c.bf16 %v1132_v40, %v1131_v39 }
 0x2e8   : > { %v1121_v59 = vadd.f32 %v3562_v61, %v1098_v43  ;;  %v1099_v60 = vmul.f32 %v3556_v58, %v1062_v44 }
 0x2e9   : > { %v1119_v62 = vadd.f32 %v3562_v61, %v1096_v54  ;;  %v1097_v63 = vmul.f32 %v3556_v58, %v1054_v55  ;;  %2521 = vmatprep.mubr.bf16.mxu0 %v1145_v57  ;;  %2568 = vmatpush3.bf16.msra.mxu0 %v2822_v31 }
 0x2ea   : > { %v1122_v0 = vadd.f32 %v3562_v61, %v1099_v60  ;;  %2522 = vmatmul.mubr.bf16.gmra.mrb[20].mxu0 %v1146_v53  ;;  %v1137_v3 = vmax.f32 %v1121_v59, 0.0 }
 0x2eb   : > { %v1120_v1 = vadd.f32 %v3562_v61, %v1097_v63  ;;  %v2499_v2 = vpop.f32.mrb[12].mxu1  ;;  %v1135_v7 = vmax.f32 %v1119_v62, 0.0 }
 0x2ec   : > { %v1138_v4 = vmax.f32 %v1122_v0, 0.0  ;;  %v1075_v5 = vadd.f32 %v2499_v2, %v3551_v56  ;;  %v1066_v6 = vpop.f32.mrb[13].mxu1 }
 0x2ed   : > { %v1136_v8 = vmax.f32 %v1120_v1, 0.0  ;;  %v1067_v9 = vadd.f32 %v3551_v56, %v1066_v6  ;;  %v2500_v10 = vpop.f32.mrb[14].mxu1  ;;  %v3622_v6 = vld [vmem:[%s3825_s8] ss:$0 sm:$0xff] }
 0x2ee   : > { %v1102_v11 = vmul.f32 %v3556_v58, %v1075_v5  ;;  %v1078_v12 = vadd.f32 %v2500_v10, %v3551_v56  ;;  %v1069_v13 = vpop.f32.mrb[15].mxu1  ;;  %v1148_v14 = vpack.c.bf16 %v1138_v4, %v1137_v3  ;;  %v2826_v3 = vld [vmem:[#allocation10 + $0x28] sm:$0xff]   ;;  %v2827_v4 = vld [vmem:[#allocation10 + $0x30] sm:$0xff]   ;;  %v2828_v5 = vld [vmem:[#allocation10 + $0x38] sm:$0xff]  }
 0x2ef   : > { %v1100_v15 = vmul.f32 %v3556_v58, %v1067_v9  ;;  %v1070_v17 = vadd.f32 %v3551_v56, %v1069_v13  ;;  %v1147_v18 = vpack.c.bf16 %v1136_v8, %v1135_v7  ;;  %v3627_v8 = vld [vmem:[%s3826_s9] ss:$0 sm:$0xff] }
 0x2f0   : > { %v1125_v19 = vadd.f32 %v3562_v61, %v1102_v11  ;;  %v1103_v20 = vmul.f32 %v3556_v58, %v1078_v12  ;;  %v3633_v10 = vld [vmem:[%s3888_s20] ss:$0 sm:$0xff]  ;;  %s3893_s20 = sld [smem:[#allocation34_spill]] }
 0x2f1   : > { %v1123_v21 = vadd.f32 %v3562_v61, %v1100_v15  ;;  %v1101_v22 = vmul.f32 %v3556_v58, %v1070_v17  ;;  %2525 = vmatprep.mubr.bf16.mxu0 %v1147_v18  ;;  %v2823_v58 = vld [vmem:[#allocation10 + $0x10] sm:$0xff]  }
 0x2f2   : > { %v1126_v23 = vadd.f32 %v3562_v61, %v1103_v20  ;;  %2526 = vmatmul.mubr.bf16.gmra.mrb[24].mxu0 %v1148_v14  ;;  %v1141_v25 = vmax.f32 %v1125_v19, 0.0  ;;  %2569 = vmatprep.subr.bf16.mxu0 %v2823_v58 }
 0x2f3   : > { %v1124_v24 = vadd.f32 %v3562_v61, %v1101_v22  ;;  %v1139_v27 = vmax.f32 %v1123_v21, 0.0  ;;  %2570 = vmatpush3.bf16.msra.mxu0 %v2823_v58  ;;  %v2825_v61 = vld [vmem:[#allocation10 + $0x20] sm:$0xff]  }
 0x2f4   : > { %v1142_v26 = vmax.f32 %v1126_v23, 0.0  ;;  %2571 = vmatprep.subr.bf16.mxu0 %v2824_v32 }
 0x2f5   : > { %v1140_v28 = vmax.f32 %v1124_v24, 0.0 }
 0x2f6   : > { %v1150_v56 = vpack.c.bf16 %v1142_v26, %v1141_v25 }
 0x2f7   : > { %v1149_v29 = vpack.c.bf16 %v1140_v28, %v1139_v27  ;;  %2572 = vmatpush3.bf16.msra.mxu0 %v2824_v32 }
 0x2f8   : > { %2573 = vmatprep.subr.bf16.mxu0 %v2825_v61 }
 0x2f9   : > { %2529 = vmatprep.mubr.bf16.mxu0 %v1149_v29 }
 0x2fa   : > { %2530 = vmatmul.mubr.bf16.gmra.mrb[28].mxu0 %v1150_v56 }
 0x2fb   : > { %2574 = vmatpush3.bf16.msra.mxu0 %v2825_v61 }
 0x2fc   : > { %2575 = vmatprep.subr.bf16.mxu0 %v2826_v3 }
 0x2ff   : > { %2576 = vmatpush3.bf16.msra.mxu0 %v2826_v3 }
 0x300   : > { %2577 = vmatprep.subr.bf16.mxu0 %v2827_v4 }
 0x303   : > { %2578 = vmatpush3.bf16.msra.mxu0 %v2827_v4 }
 0x304   : > { %2579 = vmatprep.subr.bf16.mxu0 %v2828_v5 }
 0x307   : > { %2580 = vmatpush3.bf16.msra.mxu0 %v2828_v5 }
 0x3b5   : > { %v2519_v33 = vpop.f32.mrb[16].mxu0 }
 0x3b6   : > { %v1249_v34 = vpop.f32.mrb[17].mxu0 }
 0x3b7   : > { %v2520_v35 = vpop.f32.mrb[18].mxu0 }
 0x3b8   : > { %v1313_v36 = vpack.c.bf16 %v2520_v35, %v2519_v33  ;;  %v1252_v37 = vpop.f32.mrb[19].mxu0 }
 0x3b9   : > { %v1312_v38 = vpack.c.bf16 %v1252_v37, %v1249_v34 }
 0x3bb   : > { %2533 = vmatprep.subr.bf16.mxu1 %v1312_v38 }
 0x3bc   : > { %2534 = vmatpush3.bf16.msra.mxu1 %v1312_v38 }
 0x3bd   : > { %v2523_v39 = vpop.f32.mrb[20].mxu0  ;;  %2535 = vmatprep.subr.bf16.mxu1 %v1313_v36 }
 0x3be   : > { %v1265_v40 = vpop.f32.mrb[21].mxu0 }
 0x3bf   : > { %v2524_v41 = vpop.f32.mrb[22].mxu0 }
 0x3c0   : > { %v1315_v42 = vpack.c.bf16 %v2524_v41, %v2523_v39  ;;  %v1268_v43 = vpop.f32.mrb[23].mxu0  ;;  %2536 = vmatpush3.bf16.msra.mxu1 %v1313_v36 }
 0x3c1   : > { %v1314_v44 = vpack.c.bf16 %v1268_v43, %v1265_v40 }
 0x3c3   : > { %2537 = vmatprep.subr.bf16.mxu1 %v1314_v44 }
 0x3c4   : > { %2538 = vmatpush3.bf16.msra.mxu1 %v1314_v44 }
 0x3c5   : > { %v2527_v45 = vpop.f32.mrb[24].mxu0  ;;  %2539 = vmatprep.subr.bf16.mxu1 %v1315_v42 }
 0x3c6   : > { %v1281_v53 = vpop.f32.mrb[25].mxu0 }
 0x3c7   : > { %v2528_v54 = vpop.f32.mrb[26].mxu0 }
 0x3c8   : > { %v1317_v55 = vpack.c.bf16 %v2528_v54, %v2527_v45  ;;  %v1284_v57 = vpop.f32.mrb[27].mxu0  ;;  %2540 = vmatpush3.bf16.msra.mxu1 %v1315_v42 }
 0x3c9   : > { %v1316_v59 = vpack.c.bf16 %v1284_v57, %v1281_v53 }
 0x3cb   : > { %2541 = vmatprep.subr.bf16.mxu1 %v1316_v59 }
 0x3cc   : > { %2542 = vmatpush3.bf16.msra.mxu1 %v1316_v59 }
 0x3cd   : > { %v2531_v60 = vpop.f32.mrb[28].mxu0  ;;  %2543 = vmatprep.subr.bf16.mxu1 %v1317_v55 }
 0x3ce   : > { %v1297_v62 = vpop.f32.mrb[29].mxu0 }
 0x3cf   : > { %v2532_v63 = vpop.f32.mrb[30].mxu0 }
 0x3d0   : > { %v1319_v0 = vpack.c.bf16 %v2532_v63, %v2531_v60  ;;  %v1300_v1 = vpop.f32.mrb[31].mxu0  ;;  %2544 = vmatpush3.bf16.msra.mxu1 %v1317_v55 }
 0x3d1   : > { %v1318_v2 = vpack.c.bf16 %v1300_v1, %v1297_v62 }
 0x3d3   : > { %2545 = vmatprep.subr.bf16.mxu1 %v1318_v2 }
 0x3d4   : > { %2546 = vmatpush3.bf16.msra.mxu1 %v1318_v2 }
 0x3d5   : > { %2547 = vmatprep.subr.bf16.mxu1 %v1319_v0 }
 0x3d8   : > { %2548 = vmatpush3.bf16.msra.mxu1 %v1319_v0 }
 0x3db   : > { %2550 = vmatmul.mubr.bf16.vlgmr.msra.gmra.mrb[16].mxu1 %v3520_v46 }
 0x3dc   : > { %2553 = vmatprep.mubr.bf16.mxu1 %v3523_v47 }
 0x3e3   : > { %2554 = vmatmul.mubr.bf16.gmra.mrb[20].mxu1 %v3528_v48 }
 0x3e4   : > { %2557 = vmatprep.mubr.bf16.mxu1 %v3531_v49 }
 0x3eb   : > { %2558 = vmatmul.mubr.bf16.gmra.mrb[24].mxu1 %v3536_v50 }
 0x3ec   : > { %2561 = vmatprep.mubr.bf16.mxu1 %v3539_v51 }
 0x3f3   : > { %2562 = vmatmul.mubr.bf16.gmra.mrb[28].mxu1 %v3544_v52 }
 0x3f4   : > { %2613 = vmatprep.mubr.bf16.mxu1 %v3516_v16 }
 0x4ae   : > { %v2551_v7 = vpop.f32.mrb[16].mxu1 }
 0x4af   : > { %v1370_v16 = vadd.f32 %v2551_v7, %v3622_v6  ;;  %v1361_v9 = vpop.f32.mrb[17].mxu1 }
 0x4b0   : > { %v1362_v11 = vadd.f32 %v3622_v6, %v1361_v9  ;;  %v2552_v12 = vpop.f32.mrb[18].mxu1 }
 0x4b1   : > { %v1433_v13 = vmul.f32 %v3627_v8, %v1370_v16  ;;  %v1373_v14 = vadd.f32 %v2552_v12, %v3622_v6  ;;  %v1364_v15 = vpop.f32.mrb[19].mxu1 }
 0x4b2   : > { %v1431_v17 = vmul.f32 %v3627_v8, %v1362_v11  ;;  %v1365_v18 = vadd.f32 %v3622_v6, %v1364_v15 }
 0x4b3   : > { %v1456_v19 = vadd.f32 %v3633_v10, %v1433_v13  ;;  %v1434_v20 = vmul.f32 %v3627_v8, %v1373_v14 }
 0x4b4   : > { %v1454_v21 = vadd.f32 %v3633_v10, %v1431_v17  ;;  %v1432_v22 = vmul.f32 %v3627_v8, %v1365_v18 }
 0x4b5   : > { %v1457_v23 = vadd.f32 %v3633_v10, %v1434_v20  ;;  %v1472_v26 = vmax.f32 %v1456_v19, 0.0 }
 0x4b6   : > { %v1455_v24 = vadd.f32 %v3633_v10, %v1432_v22  ;;  %v2555_v25 = vpop.f32.mrb[20].mxu1  ;;  %v1470_v29 = vmax.f32 %v1454_v21, 0.0 }
 0x4b7   : > { %v1473_v27 = vmax.f32 %v1457_v23, 0.0  ;;  %v1386_v28 = vadd.f32 %v2555_v25, %v3622_v6  ;;  %v1377_v56 = vpop.f32.mrb[21].mxu1 }
 0x4b8   : > { %v1471_v30 = vmax.f32 %v1455_v24, 0.0  ;;  %v1378_v31 = vadd.f32 %v3622_v6, %v1377_v56  ;;  %v2556_v58 = vpop.f32.mrb[22].mxu1 }
 0x4b9   : > { %v1487_v32 = vpack.c.bf16 %v1473_v27, %v1472_v26  ;;  %v1437_v61 = vmul.f32 %v3627_v8, %v1386_v28  ;;  %v1389_v33 = vadd.f32 %v2556_v58, %v3622_v6  ;;  %v1380_v34 = vpop.f32.mrb[23].mxu1 }
 0x4ba   : > { %v1435_v35 = vmul.f32 %v3627_v8, %v1378_v31  ;;  %v1381_v36 = vadd.f32 %v3622_v6, %v1380_v34  ;;  %v1486_v37 = vpack.c.bf16 %v1471_v30, %v1470_v29 }
 0x4bb   : > { %v1460_v38 = vadd.f32 %v3633_v10, %v1437_v61  ;;  %v1438_v39 = vmul.f32 %v3627_v8, %v1389_v33 }
 0x4bc   : > { %v1458_v40 = vadd.f32 %v3633_v10, %v1435_v35  ;;  %v1436_v41 = vmul.f32 %v3627_v8, %v1381_v36  ;;  %2581 = vmatprep.mubr.bf16.mxu0 %v1486_v37 }
 0x4bd   : > { %v1461_v42 = vadd.f32 %v3633_v10, %v1438_v39  ;;  %2582 = vmatmul.mubr.bf16.vlgmr.msra.gmra.mrb[32].mxu0 %v1487_v32  ;;  %v1476_v45 = vmax.f32 %v1460_v38, 0.0 }
 0x4be   : > { %v1459_v43 = vadd.f32 %v3633_v10, %v1436_v41  ;;  %v2559_v44 = vpop.f32.mrb[24].mxu1  ;;  %v1474_v57 = vmax.f32 %v1458_v40, 0.0 }
 0x4bf   : > { %v1477_v53 = vmax.f32 %v1461_v42, 0.0  ;;  %v1402_v54 = vadd.f32 %v2559_v44, %v3622_v6  ;;  %v1393_v55 = vpop.f32.mrb[25].mxu1 }
 0x4c0   : > { %v1475_v59 = vmax.f32 %v1459_v43, 0.0  ;;  %v1394_v60 = vadd.f32 %v3622_v6, %v1393_v55  ;;  %v2560_v62 = vpop.f32.mrb[26].mxu1 }
 0x4c1   : > { %v1441_v63 = vmul.f32 %v3627_v8, %v1402_v54  ;;  %v1405_v0 = vadd.f32 %v2560_v62, %v3622_v6  ;;  %v1396_v1 = vpop.f32.mrb[27].mxu1  ;;  %v1489_v2 = vpack.c.bf16 %v1477_v53, %v1476_v45 }
 0x4c2   : > { %v1439_v3 = vmul.f32 %v3627_v8, %v1394_v60  ;;  %v1397_v4 = vadd.f32 %v3622_v6, %v1396_v1  ;;  %v1488_v5 = vpack.c.bf16 %v1475_v59, %v1474_v57 }
 0x4c3   : > { %v1464_v7 = vadd.f32 %v3633_v10, %v1441_v63  ;;  %v1442_v16 = vmul.f32 %v3627_v8, %v1405_v0 }
 0x4c4   : > { %v1462_v9 = vadd.f32 %v3633_v10, %v1439_v3  ;;  %v1440_v11 = vmul.f32 %v3627_v8, %v1397_v4  ;;  %2585 = vmatprep.mubr.bf16.mxu0 %v1488_v5 }
 0x4c5   : > { %v1465_v12 = vadd.f32 %v3633_v10, %v1442_v16  ;;  %2586 = vmatmul.mubr.bf16.gmra.mrb[36].mxu0 %v1489_v2  ;;  %v1480_v15 = vmax.f32 %v1464_v7, 0.0  ;;  %v3119_v16 = vmov 0.0|0.0  }
 0x4c6   : > { %v1463_v13 = vadd.f32 %v3633_v10, %v1440_v11  ;;  %v2563_v14 = vpop.f32.mrb[28].mxu1  ;;  %v1478_v20 = vmax.f32 %v1462_v9, 0.0  ;;  %2664 = vmatprep.subr.bf16.mxu0 %v3119_v16  ;;  %v3121_v9 = vmov 0.0   ;;  %v2829_v11 = vld [vmem:[#allocation11] ss:$8 sps:$4 sm:$0xff]  }
 0x4c7   : > { %v1481_v17 = vmax.f32 %v1465_v12, 0.0  ;;  %v1418_v18 = vadd.f32 %v2563_v14, %v3622_v6  ;;  %v1409_v19 = vpop.f32.mrb[29].mxu1  ;;  %v2834_v12 = vld [vmem:[#allocation11 + $0x14] ss:$8 sps:$4 sm:$0xff]  }
 0x4c8   : > { %v1479_v21 = vmax.f32 %v1463_v13, 0.0  ;;  %v1410_v22 = vadd.f32 %v3622_v6, %v1409_v19  ;;  %v2564_v23 = vpop.f32.mrb[30].mxu1  ;;  %v2841_v13 = vld [vmem:[#allocation11 + $0x40] ss:$8 sps:$4 sm:$0xff]   ;;  %v2846_v14 = vld [vmem:[#allocation11 + $0x54] ss:$8 sps:$4 sm:$0xff]  }
 0x4c9   : > { %v1445_v24 = vmul.f32 %v3627_v8, %v1418_v18  ;;  %v1421_v25 = vadd.f32 %v2564_v23, %v3622_v6  ;;  %v1412_v26 = vpop.f32.mrb[31].mxu1  ;;  %v1491_v27 = vpack.c.bf16 %v1481_v17, %v1480_v15  ;;  %v2844_v15 = vld [vmem:[#allocation11 + $0x50] ss:$8 sps:$4 sm:$0xff]   ;;  %v2849_v17 = vld [vmem:[#allocation11 + $0x64] ss:$8 sps:$4 sm:$0xff]  }
 0x4ca   : > { %v1443_v28 = vmul.f32 %v3627_v8, %v1410_v22  ;;  %v1413_v56 = vadd.f32 %v3622_v6, %v1412_v26  ;;  %v1490_v29 = vpack.c.bf16 %v1479_v21, %v1478_v20  ;;  %v2847_v18 = vld [vmem:[#allocation11 + $0x60] ss:$8 sps:$4 sm:$0xff]   ;;  %v2852_v19 = vld [vmem:[#allocation11 + $0x74] ss:$8 sps:$4 sm:$0xff]   ;;  %v2850_v20 = vld [vmem:[#allocation11 + $0x70] ss:$8 sps:$4 sm:$0xff]  }
 0x4cb   : > { %v1468_v30 = vadd.f32 %v3633_v10, %v1445_v24  ;;  %v1446_v31 = vmul.f32 %v3627_v8, %v1421_v25  ;;  %v3693_v21 = vld [vmem:[%s3889_s18] ss:$0 sm:$0xff]  ;;  %s675_s18 = scalar_lea.vmem [#allocation13], %s2250_s15 }
 0x4cc   : > { %v1466_v58 = vadd.f32 %v3633_v10, %v1443_v28  ;;  %v1444_v32 = vmul.f32 %v3627_v8, %v1413_v56  ;;  %2589 = vmatprep.mubr.bf16.mxu0 %v1490_v29  ;;  %v3698_v23 = vld [vmem:[%s3890_s1] ss:$0 sm:$0xff]  ;;  %s2090_s30 = sshll.u32 %s675_s18, 4  ;;  %s3775_s30 = int_to_ptr.vmem [resolvable:$true] %s2090_s30 }
 0x4cd   : > { %v1469_v61 = vadd.f32 %v3633_v10, %v1446_v31  ;;  %2590 = vmatmul.mubr.bf16.gmra.mrb[40].mxu0 %v1491_v27  ;;  %v1484_v34 = vmax.f32 %v1468_v30, 0.0  ;;  %v3704_v26 = vld [vmem:[%s3891_s17] ss:$0 sm:$0xff]  ;;  %s2076_s17 = scalar_lea.sflag [#allocation4], %s3478_s19  ;;  %s3025_s21 = scalar_lea.vmem %s3775_s30, 32 }
 0x4ce   : > { %v1467_v33 = vadd.f32 %v3633_v10, %v1444_v32  ;;  %v1482_v36 = vmax.f32 %v1466_v58, 0.0  ;;  %p3026_p4 = scmp.ne.s32.totalorder %s3775_s30, %s3025_s21  ;;  %p3032_p5 = scmp.lt.s32.totalorder %s3775_s30, %s3030_s16 }
 0x4cf   : > { %v1485_v35 = vmax.f32 %v1469_v61, 0.0  ;;  %p3033_p9 = scmp.lt.s32.totalorder %s3031_s11, %s3025_s21 }
 0x4d0   : > { %v1483_v37 = vmax.f32 %v1467_v33, 0.0  ;;  %p3027_p6 = pnand %p3026_p4, %p3386_p3 }
 0x4d1   : > { %v1493_v6 = vpack.c.bf16 %v1485_v35, %v1484_v34  ;;  %p3034_p8 = por %p3033_p9, %p3032_p5 }
 0x4d2   : > { %v1492_v38 = vpack.c.bf16 %v1483_v37, %v1482_v36  ;;  %p3028_p10 = pneg %p3027_p6 }
 0x4d4   : > { %2593 = vmatprep.mubr.bf16.mxu0 %v1492_v38  ;;  %p3035_p11 = pnand %p3034_p8, %p3028_p10 }
 0x4d5   : > { %2594 = vmatmul.mubr.bf16.gmra.mrb[44].mxu0 %v1493_v6 }
 0x4d6   : > { %2661 = vmatprep.mubr.msk.f32.mxu0 %vm3120_vm0, %v3121_v9 }
 0x590   : > { %v2583_v39 = vpop.f32.mrb[32].mxu0 }
 0x591   : > { %v1592_v40 = vpop.f32.mrb[33].mxu0 }
 0x592   : > { %v2584_v41 = vpop.f32.mrb[34].mxu0 }
 0x593   : > { %v1656_v42 = vpack.c.bf16 %v2584_v41, %v2583_v39  ;;  %v1595_v43 = vpop.f32.mrb[35].mxu0 }
 0x594   : > { %v1655_v8 = vpack.c.bf16 %v1595_v43, %v1592_v40 }
 0x596   : > { %2597 = vmatprep.subr.bf16.mxu1 %v1655_v8 }
 0x597   : > { %2598 = vmatpush3.bf16.msra.mxu1 %v1655_v8 }
 0x598   : > { %v2587_v44 = vpop.f32.mrb[36].mxu0  ;;  %2599 = vmatprep.subr.bf16.mxu1 %v1656_v42 }
 0x599   : > { %v1608_v45 = vpop.f32.mrb[37].mxu0 }
 0x59a   : > { %v2588_v10 = vpop.f32.mrb[38].mxu0 }
 0x59b   : > { %v1658_v53 = vpack.c.bf16 %v2588_v10, %v2587_v44  ;;  %v1611_v54 = vpop.f32.mrb[39].mxu0  ;;  %2600 = vmatpush3.bf16.msra.mxu1 %v1656_v42 }
 0x59c   : > { %v1657_v55 = vpack.c.bf16 %v1611_v54, %v1608_v45 }
 0x59e   : > { %2601 = vmatprep.subr.bf16.mxu1 %v1657_v55 }
 0x59f   : > { %2602 = vmatpush3.bf16.msra.mxu1 %v1657_v55 }
 0x5a0   : > { %v2591_v57 = vpop.f32.mrb[40].mxu0  ;;  %2603 = vmatprep.subr.bf16.mxu1 %v1658_v53 }
 0x5a1   : > { %v1624_v59 = vpop.f32.mrb[41].mxu0 }
 0x5a2   : > { %v2592_v60 = vpop.f32.mrb[42].mxu0 }
 0x5a3   : > { %v1660_v62 = vpack.c.bf16 %v2592_v60, %v2591_v57  ;;  %v1627_v63 = vpop.f32.mrb[43].mxu0  ;;  %2604 = vmatpush3.bf16.msra.mxu1 %v1658_v53 }
 0x5a4   : > { %v1659_v0 = vpack.c.bf16 %v1627_v63, %v1624_v59 }
 0x5a6   : > { %2605 = vmatprep.subr.bf16.mxu1 %v1659_v0 }
 0x5a7   : > { %2606 = vmatpush3.bf16.msra.mxu1 %v1659_v0 }
 0x5a8   : > { %v2595_v1 = vpop.f32.mrb[44].mxu0  ;;  %2607 = vmatprep.subr.bf16.mxu1 %v1660_v62 }
 0x5a9   : > { %v1640_v2 = vpop.f32.mrb[45].mxu0 }
 0x5aa   : > { %v2596_v3 = vpop.f32.mrb[46].mxu0 }
 0x5ab   : > { %v1662_v4 = vpack.c.bf16 %v2596_v3, %v2595_v1  ;;  %v1643_v5 = vpop.f32.mrb[47].mxu0  ;;  %2608 = vmatpush3.bf16.msra.mxu1 %v1660_v62 }
 0x5ac   : > { %v1661_v7 = vpack.c.bf16 %v1643_v5, %v1640_v2 }
 0x5ae   : > { %2609 = vmatprep.subr.bf16.mxu1 %v1661_v7 }
 0x5af   : > { %2610 = vmatpush3.bf16.msra.mxu1 %v1661_v7 }
 0x5b0   : > { %2611 = vmatprep.subr.bf16.mxu1 %v1662_v4 }
 0x5b3   : > { %2612 = vmatpush3.bf16.msra.mxu1 %v1662_v4 }
 0x5b6   : > { %2614 = vmatmul.mubr.bf16.vlgmr.msra.gmra.mrb[32].mxu1 %v3520_v46  ;;  %v2831_v46 = vld [vmem:[#allocation11 + $0x4] ss:$8 sps:$4 sm:$0xff]  }
 0x5b7   : > { %2617 = vmatprep.mubr.bf16.mxu1 %v3523_v47  ;;  %2009 = vmatprep.subr.bf16.mxu1 %v2831_v46  ;;  %v2832_v47 = vld [vmem:[#allocation11 + $0x10] ss:$8 sps:$4 sm:$0xff]  }
 0x5b8   : > { %2010 = vmatpush1.bf16.msra.mxu1 %v2829_v11 }
 0x5b9   : > { %2011 = vmatprep.subr.bf16.mxu1 %v2834_v12 }
 0x5bc   : > { %2012 = vmatpush1.bf16.msra.mxu1 %v2832_v47 }
 0x5be   : > { %2618 = vmatmul.mubr.bf16.gmra.mrb[36].mxu1 %v3528_v48  ;;  %v2837_v48 = vld [vmem:[#allocation11 + $0x24] ss:$8 sps:$4 sm:$0xff]  }
 0x5bf   : > { %2621 = vmatprep.mubr.bf16.mxu1 %v3531_v49  ;;  %v2835_v49 = vld [vmem:[#allocation11 + $0x20] ss:$8 sps:$4 sm:$0xff]   ;;  %2013 = vmatprep.subr.bf16.mxu1 %v2837_v48 }
 0x5c0   : > { %2014 = vmatpush1.bf16.msra.mxu1 %v2835_v49 }
 0x5c6   : > { %2622 = vmatmul.mubr.bf16.gmra.mrb[40].mxu1 %v3536_v50  ;;  %v2840_v50 = vld [vmem:[#allocation11 + $0x34] ss:$8 sps:$4 sm:$0xff]  }
 0x5c7   : > { %2625 = vmatprep.mubr.bf16.mxu1 %v3539_v51  ;;  %v2838_v51 = vld [vmem:[#allocation11 + $0x30] ss:$8 sps:$4 sm:$0xff]   ;;  %2015 = vmatprep.subr.bf16.mxu1 %v2840_v50 }
 0x5c8   : > { %2016 = vmatpush1.bf16.msra.mxu1 %v2838_v51 }
 0x5ce   : > { %2626 = vmatmul.mubr.bf16.gmra.mrb[44].mxu1 %v3544_v52  ;;  %v2843_v52 = vld [vmem:[#allocation11 + $0x44] ss:$8 sps:$4 sm:$0xff]  }
 0x5cf   : > { %2017 = vmatprep.subr.bf16.mxu1 %v2843_v52 }
 0x5d0   : > { %2018 = vmatpush1.bf16.msra.mxu1 %v2841_v13 }
 0x5d1   : > { %2019 = vmatprep.subr.bf16.mxu1 %v2846_v14 }
 0x5d4   : > { %2020 = vmatpush1.bf16.msra.mxu1 %v2844_v15 }
 0x5d5   : > { %2021 = vmatprep.subr.bf16.mxu1 %v2849_v17 }
 0x5d8   : > { %2022 = vmatpush1.bf16.msra.mxu1 %v2847_v18 }
 0x5d9   : > { %2023 = vmatprep.subr.bf16.mxu1 %v2852_v19 }
 0x5dc   : > { %2024 = vmatpush1.bf16.msra.mxu1 %v2850_v20 }
 0x689   : > { %v2615_v22 = vpop.f32.mrb[32].mxu1 }
 0x68a   : > { %v1713_v24 = vadd.f32 %v2615_v22, %v3693_v21  ;;  %v1704_v25 = vpop.f32.mrb[33].mxu1 }
 0x68b   : > { %v1705_v27 = vadd.f32 %v3693_v21, %v1704_v25  ;;  %v2616_v28 = vpop.f32.mrb[34].mxu1 }
 0x68c   : > { %v1776_v56 = vmul.f32 %v3698_v23, %v1713_v24  ;;  %v1716_v29 = vadd.f32 %v2616_v28, %v3693_v21  ;;  %v1707_v30 = vpop.f32.mrb[35].mxu1 }
 0x68d   : > { %v1774_v31 = vmul.f32 %v3698_v23, %v1705_v27  ;;  %v1708_v58 = vadd.f32 %v3693_v21, %v1707_v30 }
 0x68e   : > { %v1799_v32 = vadd.f32 %v3704_v26, %v1776_v56  ;;  %v1777_v61 = vmul.f32 %v3698_v23, %v1716_v29 }
 0x68f   : > { %v1797_v33 = vadd.f32 %v3704_v26, %v1774_v31  ;;  %v1775_v34 = vmul.f32 %v3698_v23, %v1708_v58 }
 0x690   : > { %v1800_v35 = vadd.f32 %v3704_v26, %v1777_v61  ;;  %v1815_v6 = vmax.f32 %v1799_v32, 0.0 }
 0x691   : > { %v1798_v36 = vadd.f32 %v3704_v26, %v1775_v34  ;;  %v2619_v37 = vpop.f32.mrb[36].mxu1  ;;  %v1813_v41 = vmax.f32 %v1797_v33, 0.0 }
 0x692   : > { %v1816_v38 = vmax.f32 %v1800_v35, 0.0  ;;  %v1729_v39 = vadd.f32 %v2619_v37, %v3693_v21  ;;  %v1720_v40 = vpop.f32.mrb[37].mxu1 }
 0x693   : > { %v1814_v42 = vmax.f32 %v1798_v36, 0.0  ;;  %v1721_v43 = vadd.f32 %v3693_v21, %v1720_v40  ;;  %v2620_v8 = vpop.f32.mrb[38].mxu1 }
 0x694   : > { %v2668_v44 = vpack.c.bf16 %v1816_v38, %v1815_v6  ;;  %v1780_v45 = vmul.f32 %v3698_v23, %v1729_v39  ;;  %v1732_v10 = vadd.f32 %v2620_v8, %v3693_v21  ;;  %v1723_v53 = vpop.f32.mrb[39].mxu1 }
 0x695   : > { %v2665_v54 = vpack.c.bf16 %v1814_v42, %v1813_v41  ;;  %v1778_v55 = vmul.f32 %v3698_v23, %v1721_v43  ;;  %v1724_v57 = vadd.f32 %v3693_v21, %v1723_v53 }
 0x696   : > { %v1803_v59 = vadd.f32 %v3704_v26, %v1780_v45  ;;  %v1781_v60 = vmul.f32 %v3698_v23, %v1732_v10 }
 0x697   : > { %v1801_v62 = vadd.f32 %v3704_v26, %v1778_v55  ;;  %v1779_v63 = vmul.f32 %v3698_v23, %v1724_v57  ;;  %2666 = vmatpush3.bf16.msra.mxu0 %v2665_v54  ;;  %v1999_v55 = vlaneseq }
 0x698   : > { %v1804_v0 = vadd.f32 %v3704_v26, %v1781_v60  ;;  %2667 = vmatprep.subr.bf16.mxu0 %v3119_v16  ;;  %v1819_v3 = vmax.f32 %v1803_v59, 0.0 }
 0x699   : > { %v1802_v1 = vadd.f32 %v3704_v26, %v1779_v63  ;;  %v2623_v2 = vpop.f32.mrb[40].mxu1  ;;  %v1817_v9 = vmax.f32 %v1801_v62, 0.0  ;;  %v2000_v57 = vshrl.u32 %v1999_v55, 7  ;;  %v3123_v62 = vmov 1966171168  }
 0x69a   : > { %v1820_v4 = vmax.f32 %v1804_v0, 0.0  ;;  %v1745_v5 = vadd.f32 %v2623_v2, %v3693_v21  ;;  %v1736_v7 = vpop.f32.mrb[41].mxu1  ;;  %v2056_v63 = vunpack.c.l.s4 %v3123_v62  ;;  %vm2072_vm1 = vcmp.lt.s32.totalorder %v1999_v55, 256 }
 0x69b   : > { %v1818_v11 = vmax.f32 %v1802_v1, 0.0  ;;  %v1737_v46 = vadd.f32 %v3693_v21, %v1736_v7  ;;  %v2624_v12 = vpop.f32.mrb[42].mxu1  ;;  %2669 = vmatpush3.bf16.msra.mxu0 %v2668_v44  ;;  %v2001_v59 = vsub.s32 0, %v2000_v57  ;;  %v2005_v60 = vsub.s32 1, %v2000_v57 }
 0x69c   : > { %v2674_v47 = vpack.c.bf16 %v1820_v4, %v1819_v3  ;;  %v1784_v48 = vmul.f32 %v3698_v23, %v1745_v5  ;;  %v1748_v49 = vadd.f32 %v2624_v12, %v3693_v21  ;;  %v1739_v50 = vpop.f32.mrb[43].mxu1  ;;  %2670 = vmatprep.subr.bf16.mxu0 %v3119_v16  ;;  %v2057_v3 = vunpack.c.0.s8 %v2056_v63 }
 0x69d   : > { %v2671_v51 = vpack.c.bf16 %v1818_v11, %v1817_v9  ;;  %v1782_v52 = vmul.f32 %v3698_v23, %v1737_v46  ;;  %v1740_v13 = vadd.f32 %v3693_v21, %v1739_v50 }
 0x69e   : > { %v1807_v14 = vadd.f32 %v3704_v26, %v1784_v48  ;;  %v1785_v15 = vmul.f32 %v3698_v23, %v1748_v49 }
 0x69f   : > { %v1805_v17 = vadd.f32 %v3704_v26, %v1782_v52  ;;  %v1783_v18 = vmul.f32 %v3698_v23, %v1740_v13  ;;  %2672 = vmatpush3.bf16.msra.mxu0 %v2671_v51 }
 0x6a0   : > { %v1808_v19 = vadd.f32 %v3704_v26, %v1785_v15  ;;  %2673 = vmatprep.subr.bf16.mxu0 %v3119_v16  ;;  %v1823_v24 = vmax.f32 %v1807_v14, 0.0 }
 0x6a1   : > { %v1806_v20 = vadd.f32 %v3704_v26, %v1783_v18  ;;  %v2627_v22 = vpop.f32.mrb[44].mxu1  ;;  %v1821_v56 = vmax.f32 %v1805_v17, 0.0 }
 0x6a2   : > { %v1824_v25 = vmax.f32 %v1808_v19, 0.0  ;;  %v1761_v27 = vadd.f32 %v2627_v22, %v3693_v21  ;;  %v1752_v28 = vpop.f32.mrb[45].mxu1 }
 0x6a3   : > { %v1822_v29 = vmax.f32 %v1806_v20, 0.0  ;;  %v1753_v30 = vadd.f32 %v3693_v21, %v1752_v28  ;;  %v2628_v31 = vpop.f32.mrb[46].mxu1  ;;  %2675 = vmatpush3.bf16.msra.mxu0 %v2674_v47  ;;  %v2060_v47 = vsub.s32 %v2057_v3, %v2000_v57 }
 0x6a4   : > { %v2680_v58 = vpack.c.bf16 %v1824_v25, %v1823_v24  ;;  %v1788_v32 = vmul.f32 %v3698_v23, %v1761_v27  ;;  %v1764_v61 = vadd.f32 %v2628_v31, %v3693_v21  ;;  %v1755_v33 = vpop.f32.mrb[47].mxu1  ;;  %2676 = vmatprep.subr.bf16.mxu0 %v3119_v16 }
 0x6a5   : > { %v2677_v34 = vpack.c.bf16 %v1822_v29, %v1821_v56  ;;  %v1786_v35 = vmul.f32 %v3698_v23, %v1753_v30  ;;  %v1756_v36 = vadd.f32 %v3693_v21, %v1755_v33 }
 0x6a6   : > { %v1811_v37 = vadd.f32 %v3704_v26, %v1788_v32  ;;  %v1789_v6 = vmul.f32 %v3698_v23, %v1764_v61 }
 0x6a7   : > { %v1809_v38 = vadd.f32 %v3704_v26, %v1786_v35  ;;  %v1787_v39 = vmul.f32 %v3698_v23, %v1756_v36  ;;  %2678 = vmatpush3.bf16.msra.mxu0 %v2677_v34  ;;  %v1829_v23 = vld [vmem:[%s678_s12] sm:$0x1] }
 0x6a8   : > { %v1812_v40 = vadd.f32 %v3704_v26, %v1789_v6  ;;  %2679 = vmatprep.subr.bf16.mxu0 %v3119_v16  ;;  %v1827_v42 = vmax.f32 %v1811_v37, 0.0 }
 0x6a9   : > { %v1810_v41 = vadd.f32 %v3704_v26, %v1787_v39  ;;  %v1825_v21 = vmax.f32 %v1809_v38, 0.0  ;;  %v3122_v26 = vmov 0  }
 0x6aa   : > { %v1828_v43 = vmax.f32 %v1812_v40, 0.0  ;;  %2041 = vmatprep.mubr.bf16.mxu1 %v3122_v26 }
 0x6ab   : > { %v1826_v8 = vmax.f32 %v1810_v41, 0.0  ;;  %2681 = vmatpush3.bf16.msra.mxu0 %v2680_v58 }
 0x6ac   : > { %v2686_v44 = vpack.c.bf16 %v1828_v43, %v1827_v42  ;;  %2682 = vmatprep.subr.bf16.mxu0 %v3119_v16 }
 0x6ad   : > { %v2683_v45 = vpack.c.bf16 %v1826_v8, %v1825_v21 }
 0x6af   : > { %2684 = vmatpush3.bf16.msra.mxu0 %v2683_v45 }
 0x6b0   : > { %2685 = vmatprep.subr.bf16.mxu0 %v3119_v16  ;;  %v1917_v16 = vld [vmem:[%s3893_s20] sm:$0x3] }
 0x6b1   : > { %v2002_v0 = vrot.slane %v1917_v16, %v2001_v59  ;;  %v2006_v1 = vrot.slane %v1917_v16, %v2005_v60 }
 0x6b3   : > { %2687 = vmatpush3.bf16.msra.mxu0 %v2686_v44 }
 0x6b6   : > { %2662 = vmatmul.mubr.f32.vlgmr.msra.gmra.mrb[48].mxu0 %v1829_v23 }
 0x789   : > { %v1896_v10 = vpop.f32.mrb[48].mxu0 }
 0x78a   : > { %v1900_v53 = vpack.c.bf16 %v1896_v10, %v1896_v10  ;;  %v2663_v54 = vpop.f32.mrb[49].mxu0 }
 0x78c   : > { %2042 = vmatmul.mubr.bf16.vlgmr.msra.gmra.mrb[48].mxu1 %v1900_v53 }
 0x85f   : > { %v2043_v2 = vpop.f32.mrb[48].mxu1 }
 0x860   : > { %v2044_v4 = vadd.f32 %v2043_v2, %v2002_v0  ;;  %v2045_v5 = vpop.f32.mrb[49].mxu1 }
 0x861   : > { %v2046_v7 = vadd.f32 %v2045_v5, %v2006_v1  ;;  %v2047_v9 = vpop.f32.mrb[50].mxu1 }
 0x862   : > { %v2050_v11 = vmax.f32 %v2044_v4, 0.0  ;;  %v2048_v46 = vpop.f32.mrb[51].mxu1 }
 0x863   : > { %v2051_v12 = vmax.f32 %v2046_v7, 0.0 }
 0x865   : > { %v2054_v48 = vcombine.low %v2050_v11, %v2051_v12 }
 0x867   : > { %v2061_v49 = vrot.slane %v2054_v48, %v2060_v47 }
 0x869   : > { %v2068_v50 = vrot.slane %v2061_v49, %v2060_v47 }
 0x86b   : > { %2074 = vst.msk [vmem:[%s675_s18] sm:$0x3] %vm2072_vm1, %v2068_v50 }
 0x86c   : > { %3038 = shalt.err (!%p3035_p11)
}
 0x86d   : > { %s3039_s19 = scalar_lea.hbm %s3773_s29, 32  ;;  %s3043_s10 = scalar_lea.hbm %s3894_s13, 64 }
 0x86e   : > { %p3040_p7 = scmp.ne.s32.totalorder %s3773_s29, %s3039_s19  ;;  %p3044_p2 = scmp.lt.u32.totalorder %s3773_s29, %s3894_s13 }
 0x86f   : > { %p3045_p13 = scmp.lt.u32.totalorder %s3043_s10, %s3039_s19  ;;  %p3047_p4 = scmp.lt.u32.totalorder %s3039_s19, %s3773_s29 }
 0x870   : > { %p3041_p12 = pnand %p3040_p7, %p3386_p3 }
 0x871   : > { %p3046_p0 = por %p3045_p13, %p3044_p2 }
 0x872   : > { %p3042_p1 = pneg %p3041_p12 }
 0x873   : > { %p3048_p6 = por %p3047_p4, %p3046_p0 }
 0x875   : > { %p3049_p10 = pnand %p3048_p6, %p3042_p1 }
 0x877   : > { %3052 = shalt.err (!%p3049_p10)
}
 0x878   : > { %2708 = dma.vmem_to_hbm [thread:$0]  (%p3386_p3), %s3775_s30, 32, %s3773_s29, %s2076_s17  }
 0x879 PF: > { %s3895_s15 = sld [smem:[#allocation20_spill]]  ;;  %s3896_s7 = sld [smem:[#allocation21_spill]] }
 0x87a   : > { %p3898_p9 = scmp.ge.s32.totalorder %s3107_s27, 2 }
 0x87f   : > { %s2102_s18 = sand.u32 1, %s3895_s15   ;;  %p3897_p5 = scmp.ne.s32.totalorder %s3896_s7, 0 }
 0x880   : > { %s2103_s0 = scalar_lea.sflag [#allocation4], %s2102_s18 }
 0x881   : > { %p2731_p8 = pnand %p3898_p9, %p3897_p5 }
 0x883   : > { %3090 = dma.done.wait (!%p2731_p8), %s2103_s0, 32  }
 0x884   : > { %3092 = vsyncadd (!%p2731_p8), %s2103_s0, 4294967264  ;;  %s3899_s1 = sld [smem:[#allocation22_spill]]  ;;  %p35_p11 = scmp.ge.s32.totalorder %s3373_s14, 4  }
 0x885   : > { %s3900_s24 = smov %s3099_s25  ;;  %s3901_s25 = smov %s3103_s26 }
 0x886   : > { %s3903_s27 = smov %s3373_s14  ;;  %37 = sbr.rel (!%p35_p11) target bundleno = 23 (0x17), region = 165 }
 0x88a   : > { %s3902_s26 = smov %s3899_s1 }
 0x88d   :  { %2108 = vsyncpa [#allocation3], 1 }
 0x88e   :  { %2110 = vsyncpa [#allocation3 + $0x1], 1 }
 0x88f   :  { %2111 = vsyncpa [#allocation6], 1 }
 0x890   :  { %2113 = vsyncpa [#allocation6 + $0x1], 1 }
 0x891   :  { %2114 = vsyncpa [#allocation9], 1 }
 0x892   :  { %2115 = vsyncpa [#allocation12], 1 }
 0x893   :  { %2116 = vsyncpa [#allocation4], 1 }
 0x894   :  { %2118 = vsyncpa [#allocation4 + $0x1], 1 }

</bundles_post_ra>
